<compile_context>
chip_gen: v6e
topology: v6e:2x2x1
jax: 0.10.0
libtpu: 0.0.40
codegen_flags: <defaults>
</compile_context>

<pallas_src>
import jax
import jax.numpy as jnp
from jax.experimental import pallas as pl
from jax.experimental.pallas import tpu as pltpu

H = 10  # hidden width of fc1..fc3

# Offsets into the packed f32[251] parameter vector (row-major flattening).
_OFF_W1, _OFF_B1 = 0, 10          # w1: (1,10),  b1: (10,)
_OFF_W2, _OFF_B2 = 20, 120        # w2: (10,10), b2: (10,)
_OFF_W3, _OFF_B3 = 130, 230       # w3: (10,10), b3: (10,)
_OFF_W4, _OFF_B4 = 240, 250       # w4: (10,1),  b4: (1,)
_N_PARAMS = 251


def dnn_kernel(p_ref, x_ref, o_ref):
    """p_ref: SMEM f32[251] (scalar-prefetched params).
    x_ref / o_ref: (rows_tile, 128) lane-dense batch tiles."""
    x = x_ref[...]  # (rows_tile, 128) f32; each lane is one batch sample

    # fc1: 1 -> 10, ReLU.  Scalar splats from SMEM, pure VPU.
    h = [jnp.maximum(x * p_ref[_OFF_W1 + j] + p_ref[_OFF_B1 + j], 0.0)
         for j in range(H)]

    # fc2 / fc3: 10 -> 10, ReLU.  Fully unrolled 10x10 scalar-splat MACs each.
    for off_w, off_b in ((_OFF_W2, _OFF_B2), (_OFF_W3, _OFF_B3)):
        nxt = []
        for j in range(H):
            s = h[0] * p_ref[off_w + j]
            for i in range(1, H):
                s = s + h[i] * p_ref[off_w + i * H + j]
            nxt.append(jnp.maximum(s + p_ref[off_b + j], 0.0))
        h = nxt

    # fc4: 10 -> 1 (no activation).
    y = h[0] * p_ref[_OFF_W4 + 0]
    for i in range(1, H):
        y = y + h[i] * p_ref[_OFF_W4 + i]
    y = y + p_ref[_OFF_B4]

    o_ref[...] = y.astype(o_ref.dtype)


def pack_params(p):
    """Flatten all weights/biases into one f32[251] vector for SMEM prefetch."""
    packed = jnp.concatenate([
        p["w1"].reshape(-1), p["b1"].reshape(-1),
        p["w2"].reshape(-1), p["b2"].reshape(-1),
        p["w3"].reshape(-1), p["b3"].reshape(-1),
        p["w4"].reshape(-1), p["b4"].reshape(-1),
    ]).astype(jnp.float32)
    assert packed.shape[0] == _N_PARAMS
    return packed


def dnn_forward(x, params, *, lanes=128, rows_per_tile=64):
    """x: (N, 1) float32. Returns (N, 1) float32 matching the PyTorch DNN forward."""
    N = x.shape[0]
    packed = pack_params(params)

    rows = pl.cdiv(N, lanes)              # lane-dense rows needed to hold the batch
    rows = pl.cdiv(rows, 8) * 8           # sublane granularity (8)
    tile = max(8, min(rows_per_tile, rows))
    tile = (tile // 8) * 8                # tile must be a multiple of 8 rows
    rows_padded = pl.cdiv(rows, tile) * tile
    n_padded = rows_padded * lanes

    # Lane-dense re-layout: sample n -> (n // 128, n % 128); zero-pad the tail.
    x_lanes = jnp.pad(x.reshape(-1).astype(jnp.float32),
                      (0, n_padded - N)).reshape(rows_padded, lanes)

    out2d = pl.pallas_call(
        dnn_kernel,
        out_shape=jax.ShapeDtypeStruct((rows_padded, lanes), jnp.float32),
        grid_spec=pltpu.PrefetchScalarGridSpec(
            num_scalar_prefetch=1,                 # packed params -> SMEM
            grid=(rows_padded // tile,),
            in_specs=[pl.BlockSpec((tile, lanes), lambda i, p: (i, 0))],
            out_specs=pl.BlockSpec((tile, lanes), lambda i, p: (i, 0)),
        ),
        compiler_params=pltpu.CompilerParams(
            dimension_semantics=("parallel",)),    # shards row tiles across v7x TCs
    )(packed, x_lanes)

    # Undo padding / re-layout back to (N, 1).
    return out2d.reshape(-1)[:N].reshape(N, 1).astype(x.dtype)


def init_params(key):
    """Deterministic init matching nn.Linear shapes (weights stored as (in, out))."""
    sizes = [(1, 10), (10, 10), (10, 10), (10, 1)]
    params = {}
    for idx, (fin, fout) in enumerate(sizes, start=1):
        key, kw, kb = jax.random.split(key, 3)
        bound = 1.0 / jnp.sqrt(jnp.float32(fin))   # PyTorch default U(-1/sqrt(fin), ..)
        params[f"w{idx}"] = jax.random.uniform(kw, (fin, fout), jnp.float32, -bound, bound)
        params[f"b{idx}"] = jax.random.uniform(kb, (1, fout), jnp.float32, -bound, bound)
    return params


def dnn_reference(x, p):
    h = jnp.maximum(x @ p["w1"] + p["b1"], 0.0)
    h = jnp.maximum(h @ p["w2"] + p["b2"], 0.0)
    h = jnp.maximum(h @ p["w3"] + p["b3"], 0.0)
    return h @ p["w4"] + p["b4"]


if __name__ == "__main__":
    key = jax.random.PRNGKey(0)
    params = init_params(key)

    # Matches the PyTorch spec: torch.linspace(-1, 1, 1000).reshape(-1, 1)
    N = 1000
    x = jnp.linspace(-1.0, 1.0, N, dtype=jnp.float32).reshape(-1, 1)

    out = jax.block_until_ready(dnn_forward(x, params))
    ref = dnn_reference(x, params)

    assert out.shape == (N, 1)
    assert jnp.allclose(out, ref, atol=1e-5, rtol=1e-5), "mismatch vs JAX reference"
    print("KERNEL_OK")
</pallas_src>

<mosaic_0001>
module attributes {stable_mosaic.version = 11 : i64} {
  func.func @dnn_kernel(%arg0: i32, %arg1: memref<251xf32, #tpu.memory_space<smem>>, %arg2: memref<8x128xf32, #tpu.memory_space<vmem>>, %arg3: memref<8x128xf32, #tpu.memory_space<vmem>>) attributes {dimension_semantics = [#tpu.dimension_semantics<parallel>], iteration_bounds = array<i64: 1>, scalar_prefetch = 1 : i64, scratch_operands = 0 : i64, tpu.core_type = #tpu.core_type<tc>, window_params = [{transform_indices = @transform_0, window_bounds = array<i64: 8, 128>}, {transform_indices = @transform_1, window_bounds = array<i64: 8, 128>}]} {
    %c0 = arith.constant 0 : index
    %c0_0 = arith.constant 0 : index
    %0 = vector.load %arg2[%c0, %c0_0] : memref<8x128xf32, #tpu.memory_space<vmem>>, vector<8x128xf32>
    %c0_1 = arith.constant 0 : index
    %1 = memref.load %arg1[%c0_1] : memref<251xf32, #tpu.memory_space<smem>>
    %2 = vector.broadcast %1 : f32 to vector<8x128xf32>
    %3 = arith.mulf %0, %2 : vector<8x128xf32>
    %c10 = arith.constant 10 : index
    %4 = memref.load %arg1[%c10] : memref<251xf32, #tpu.memory_space<smem>>
    %5 = vector.broadcast %4 : f32 to vector<8x128xf32>
    %6 = arith.addf %3, %5 : vector<8x128xf32>
    %cst = arith.constant 0.000000e+00 : f32
    %7 = vector.broadcast %cst : f32 to vector<8x128xf32>
    %8 = arith.maximumf %6, %7 : vector<8x128xf32>
    %c1 = arith.constant 1 : index
    %9 = memref.load %arg1[%c1] : memref<251xf32, #tpu.memory_space<smem>>
    %10 = vector.broadcast %9 : f32 to vector<8x128xf32>
    %11 = arith.mulf %0, %10 : vector<8x128xf32>
    %c11 = arith.constant 11 : index
    %12 = memref.load %arg1[%c11] : memref<251xf32, #tpu.memory_space<smem>>
    %13 = vector.broadcast %12 : f32 to vector<8x128xf32>
    %14 = arith.addf %11, %13 : vector<8x128xf32>
    %cst_2 = arith.constant 0.000000e+00 : f32
    %15 = vector.broadcast %cst_2 : f32 to vector<8x128xf32>
    %16 = arith.maximumf %14, %15 : vector<8x128xf32>
    %c2 = arith.constant 2 : index
    %17 = memref.load %arg1[%c2] : memref<251xf32, #tpu.memory_space<smem>>
    %18 = vector.broadcast %17 : f32 to vector<8x128xf32>
    %19 = arith.mulf %0, %18 : vector<8x128xf32>
    %c12 = arith.constant 12 : index
    %20 = memref.load %arg1[%c12] : memref<251xf32, #tpu.memory_space<smem>>
    %21 = vector.broadcast %20 : f32 to vector<8x128xf32>
    %22 = arith.addf %19, %21 : vector<8x128xf32>
    %cst_3 = arith.constant 0.000000e+00 : f32
    %23 = vector.broadcast %cst_3 : f32 to vector<8x128xf32>
    %24 = arith.maximumf %22, %23 : vector<8x128xf32>
    %c3 = arith.constant 3 : index
    %25 = memref.load %arg1[%c3] : memref<251xf32, #tpu.memory_space<smem>>
    %26 = vector.broadcast %25 : f32 to vector<8x128xf32>
    %27 = arith.mulf %0, %26 : vector<8x128xf32>
    %c13 = arith.constant 13 : index
    %28 = memref.load %arg1[%c13] : memref<251xf32, #tpu.memory_space<smem>>
    %29 = vector.broadcast %28 : f32 to vector<8x128xf32>
    %30 = arith.addf %27, %29 : vector<8x128xf32>
    %cst_4 = arith.constant 0.000000e+00 : f32
    %31 = vector.broadcast %cst_4 : f32 to vector<8x128xf32>
    %32 = arith.maximumf %30, %31 : vector<8x128xf32>
    %c4 = arith.constant 4 : index
    %33 = memref.load %arg1[%c4] : memref<251xf32, #tpu.memory_space<smem>>
    %34 = vector.broadcast %33 : f32 to vector<8x128xf32>
    %35 = arith.mulf %0, %34 : vector<8x128xf32>
    %c14 = arith.constant 14 : index
    %36 = memref.load %arg1[%c14] : memref<251xf32, #tpu.memory_space<smem>>
    %37 = vector.broadcast %36 : f32 to vector<8x128xf32>
    %38 = arith.addf %35, %37 : vector<8x128xf32>
    %cst_5 = arith.constant 0.000000e+00 : f32
    %39 = vector.broadcast %cst_5 : f32 to vector<8x128xf32>
    %40 = arith.maximumf %38, %39 : vector<8x128xf32>
    %c5 = arith.constant 5 : index
    %41 = memref.load %arg1[%c5] : memref<251xf32, #tpu.memory_space<smem>>
    %42 = vector.broadcast %41 : f32 to vector<8x128xf32>
    %43 = arith.mulf %0, %42 : vector<8x128xf32>
    %c15 = arith.constant 15 : index
    %44 = memref.load %arg1[%c15] : memref<251xf32, #tpu.memory_space<smem>>
    %45 = vector.broadcast %44 : f32 to vector<8x128xf32>
    %46 = arith.addf %43, %45 : vector<8x128xf32>
    %cst_6 = arith.constant 0.000000e+00 : f32
    %47 = vector.broadcast %cst_6 : f32 to vector<8x128xf32>
    %48 = arith.maximumf %46, %47 : vector<8x128xf32>
    %c6 = arith.constant 6 : index
    %49 = memref.load %arg1[%c6] : memref<251xf32, #tpu.memory_space<smem>>
    %50 = vector.broadcast %49 : f32 to vector<8x128xf32>
    %51 = arith.mulf %0, %50 : vector<8x128xf32>
    %c16 = arith.constant 16 : index
    %52 = memref.load %arg1[%c16] : memref<251xf32, #tpu.memory_space<smem>>
    %53 = vector.broadcast %52 : f32 to vector<8x128xf32>
    %54 = arith.addf %51, %53 : vector<8x128xf32>
    %cst_7 = arith.constant 0.000000e+00 : f32
    %55 = vector.broadcast %cst_7 : f32 to vector<8x128xf32>
    %56 = arith.maximumf %54, %55 : vector<8x128xf32>
    %c7 = arith.constant 7 : index
    %57 = memref.load %arg1[%c7] : memref<251xf32, #tpu.memory_space<smem>>
    %58 = vector.broadcast %57 : f32 to vector<8x128xf32>
    %59 = arith.mulf %0, %58 : vector<8x128xf32>
    %c17 = arith.constant 17 : index
    %60 = memref.load %arg1[%c17] : memref<251xf32, #tpu.memory_space<smem>>
    %61 = vector.broadcast %60 : f32 to vector<8x128xf32>
    %62 = arith.addf %59, %61 : vector<8x128xf32>
    %cst_8 = arith.constant 0.000000e+00 : f32
    %63 = vector.broadcast %cst_8 : f32 to vector<8x128xf32>
    %64 = arith.maximumf %62, %63 : vector<8x128xf32>
    %c8 = arith.constant 8 : index
    %65 = memref.load %arg1[%c8] : memref<251xf32, #tpu.memory_space<smem>>
    %66 = vector.broadcast %65 : f32 to vector<8x128xf32>
    %67 = arith.mulf %0, %66 : vector<8x128xf32>
    %c18 = arith.constant 18 : index
    %68 = memref.load %arg1[%c18] : memref<251xf32, #tpu.memory_space<smem>>
    %69 = vector.broadcast %68 : f32 to vector<8x128xf32>
    %70 = arith.addf %67, %69 : vector<8x128xf32>
    %cst_9 = arith.constant 0.000000e+00 : f32
    %71 = vector.broadcast %cst_9 : f32 to vector<8x128xf32>
    %72 = arith.maximumf %70, %71 : vector<8x128xf32>
    %c9 = arith.constant 9 : index
    %73 = memref.load %arg1[%c9] : memref<251xf32, #tpu.memory_space<smem>>
    %74 = vector.broadcast %73 : f32 to vector<8x128xf32>
    %75 = arith.mulf %0, %74 : vector<8x128xf32>
    %c19 = arith.constant 19 : index
    %76 = memref.load %arg1[%c19] : memref<251xf32, #tpu.memory_space<smem>>
    %77 = vector.broadcast %76 : f32 to vector<8x128xf32>
    %78 = arith.addf %75, %77 : vector<8x128xf32>
    %cst_10 = arith.constant 0.000000e+00 : f32
    %79 = vector.broadcast %cst_10 : f32 to vector<8x128xf32>
    %80 = arith.maximumf %78, %79 : vector<8x128xf32>
    %c20 = arith.constant 20 : index
    %81 = memref.load %arg1[%c20] : memref<251xf32, #tpu.memory_space<smem>>
    %82 = vector.broadcast %81 : f32 to vector<8x128xf32>
    %83 = arith.mulf %8, %82 : vector<8x128xf32>
    %c30 = arith.constant 30 : index
    %84 = memref.load %arg1[%c30] : memref<251xf32, #tpu.memory_space<smem>>
    %85 = vector.broadcast %84 : f32 to vector<8x128xf32>
    %86 = arith.mulf %16, %85 : vector<8x128xf32>
    %87 = arith.addf %83, %86 : vector<8x128xf32>
    %c40 = arith.constant 40 : index
    %88 = memref.load %arg1[%c40] : memref<251xf32, #tpu.memory_space<smem>>
    %89 = vector.broadcast %88 : f32 to vector<8x128xf32>
    %90 = arith.mulf %24, %89 : vector<8x128xf32>
    %91 = arith.addf %87, %90 : vector<8x128xf32>
    %c50 = arith.constant 50 : index
    %92 = memref.load %arg1[%c50] : memref<251xf32, #tpu.memory_space<smem>>
    %93 = vector.broadcast %92 : f32 to vector<8x128xf32>
    %94 = arith.mulf %32, %93 : vector<8x128xf32>
    %95 = arith.addf %91, %94 : vector<8x128xf32>
    %c60 = arith.constant 60 : index
    %96 = memref.load %arg1[%c60] : memref<251xf32, #tpu.memory_space<smem>>
    %97 = vector.broadcast %96 : f32 to vector<8x128xf32>
    %98 = arith.mulf %40, %97 : vector<8x128xf32>
    %99 = arith.addf %95, %98 : vector<8x128xf32>
    %c70 = arith.constant 70 : index
    %100 = memref.load %arg1[%c70] : memref<251xf32, #tpu.memory_space<smem>>
    %101 = vector.broadcast %100 : f32 to vector<8x128xf32>
    %102 = arith.mulf %48, %101 : vector<8x128xf32>
    %103 = arith.addf %99, %102 : vector<8x128xf32>
    %c80 = arith.constant 80 : index
    %104 = memref.load %arg1[%c80] : memref<251xf32, #tpu.memory_space<smem>>
    %105 = vector.broadcast %104 : f32 to vector<8x128xf32>
    %106 = arith.mulf %56, %105 : vector<8x128xf32>
    %107 = arith.addf %103, %106 : vector<8x128xf32>
    %c90 = arith.constant 90 : index
    %108 = memref.load %arg1[%c90] : memref<251xf32, #tpu.memory_space<smem>>
    %109 = vector.broadcast %108 : f32 to vector<8x128xf32>
    %110 = arith.mulf %64, %109 : vector<8x128xf32>
    %111 = arith.addf %107, %110 : vector<8x128xf32>
    %c100 = arith.constant 100 : index
    %112 = memref.load %arg1[%c100] : memref<251xf32, #tpu.memory_space<smem>>
    %113 = vector.broadcast %112 : f32 to vector<8x128xf32>
    %114 = arith.mulf %72, %113 : vector<8x128xf32>
    %115 = arith.addf %111, %114 : vector<8x128xf32>
    %c110 = arith.constant 110 : index
    %116 = memref.load %arg1[%c110] : memref<251xf32, #tpu.memory_space<smem>>
    %117 = vector.broadcast %116 : f32 to vector<8x128xf32>
    %118 = arith.mulf %80, %117 : vector<8x128xf32>
    %119 = arith.addf %115, %118 : vector<8x128xf32>
    %c120 = arith.constant 120 : index
    %120 = memref.load %arg1[%c120] : memref<251xf32, #tpu.memory_space<smem>>
    %121 = vector.broadcast %120 : f32 to vector<8x128xf32>
    %122 = arith.addf %119, %121 : vector<8x128xf32>
    %cst_11 = arith.constant 0.000000e+00 : f32
    %123 = vector.broadcast %cst_11 : f32 to vector<8x128xf32>
    %124 = arith.maximumf %122, %123 : vector<8x128xf32>
    %c21 = arith.constant 21 : index
    %125 = memref.load %arg1[%c21] : memref<251xf32, #tpu.memory_space<smem>>
    %126 = vector.broadcast %125 : f32 to vector<8x128xf32>
    %127 = arith.mulf %8, %126 : vector<8x128xf32>
    %c31 = arith.constant 31 : index
    %128 = memref.load %arg1[%c31] : memref<251xf32, #tpu.memory_space<smem>>
    %129 = vector.broadcast %128 : f32 to vector<8x128xf32>
    %130 = arith.mulf %16, %129 : vector<8x128xf32>
    %131 = arith.addf %127, %130 : vector<8x128xf32>
    %c41 = arith.constant 41 : index
    %132 = memref.load %arg1[%c41] : memref<251xf32, #tpu.memory_space<smem>>
    %133 = vector.broadcast %132 : f32 to vector<8x128xf32>
    %134 = arith.mulf %24, %133 : vector<8x128xf32>
    %135 = arith.addf %131, %134 : vector<8x128xf32>
    %c51 = arith.constant 51 : index
    %136 = memref.load %arg1[%c51] : memref<251xf32, #tpu.memory_space<smem>>
    %137 = vector.broadcast %136 : f32 to vector<8x128xf32>
    %138 = arith.mulf %32, %137 : vector<8x128xf32>
    %139 = arith.addf %135, %138 : vector<8x128xf32>
    %c61 = arith.constant 61 : index
    %140 = memref.load %arg1[%c61] : memref<251xf32, #tpu.memory_space<smem>>
    %141 = vector.broadcast %140 : f32 to vector<8x128xf32>
    %142 = arith.mulf %40, %141 : vector<8x128xf32>
    %143 = arith.addf %139, %142 : vector<8x128xf32>
    %c71 = arith.constant 71 : index
    %144 = memref.load %arg1[%c71] : memref<251xf32, #tpu.memory_space<smem>>
    %145 = vector.broadcast %144 : f32 to vector<8x128xf32>
    %146 = arith.mulf %48, %145 : vector<8x128xf32>
    %147 = arith.addf %143, %146 : vector<8x128xf32>
    %c81 = arith.constant 81 : index
    %148 = memref.load %arg1[%c81] : memref<251xf32, #tpu.memory_space<smem>>
    %149 = vector.broadcast %148 : f32 to vector<8x128xf32>
    %150 = arith.mulf %56, %149 : vector<8x128xf32>
    %151 = arith.addf %147, %150 : vector<8x128xf32>
    %c91 = arith.constant 91 : index
    %152 = memref.load %arg1[%c91] : memref<251xf32, #tpu.memory_space<smem>>
    %153 = vector.broadcast %152 : f32 to vector<8x128xf32>
    %154 = arith.mulf %64, %153 : vector<8x128xf32>
    %155 = arith.addf %151, %154 : vector<8x128xf32>
    %c101 = arith.constant 101 : index
    %156 = memref.load %arg1[%c101] : memref<251xf32, #tpu.memory_space<smem>>
    %157 = vector.broadcast %156 : f32 to vector<8x128xf32>
    %158 = arith.mulf %72, %157 : vector<8x128xf32>
    %159 = arith.addf %155, %158 : vector<8x128xf32>
    %c111 = arith.constant 111 : index
    %160 = memref.load %arg1[%c111] : memref<251xf32, #tpu.memory_space<smem>>
    %161 = vector.broadcast %160 : f32 to vector<8x128xf32>
    %162 = arith.mulf %80, %161 : vector<8x128xf32>
    %163 = arith.addf %159, %162 : vector<8x128xf32>
    %c121 = arith.constant 121 : index
    %164 = memref.load %arg1[%c121] : memref<251xf32, #tpu.memory_space<smem>>
    %165 = vector.broadcast %164 : f32 to vector<8x128xf32>
    %166 = arith.addf %163, %165 : vector<8x128xf32>
    %cst_12 = arith.constant 0.000000e+00 : f32
    %167 = vector.broadcast %cst_12 : f32 to vector<8x128xf32>
    %168 = arith.maximumf %166, %167 : vector<8x128xf32>
    %c22 = arith.constant 22 : index
    %169 = memref.load %arg1[%c22] : memref<251xf32, #tpu.memory_space<smem>>
    %170 = vector.broadcast %169 : f32 to vector<8x128xf32>
    %171 = arith.mulf %8, %170 : vector<8x128xf32>
    %c32 = arith.constant 32 : index
    %172 = memref.load %arg1[%c32] : memref<251xf32, #tpu.memory_space<smem>>
    %173 = vector.broadcast %172 : f32 to vector<8x128xf32>
    %174 = arith.mulf %16, %173 : vector<8x128xf32>
    %175 = arith.addf %171, %174 : vector<8x128xf32>
    %c42 = arith.constant 42 : index
    %176 = memref.load %arg1[%c42] : memref<251xf32, #tpu.memory_space<smem>>
    %177 = vector.broadcast %176 : f32 to vector<8x128xf32>
    %178 = arith.mulf %24, %177 : vector<8x128xf32>
    %179 = arith.addf %175, %178 : vector<8x128xf32>
    %c52 = arith.constant 52 : index
    %180 = memref.load %arg1[%c52] : memref<251xf32, #tpu.memory_space<smem>>
    %181 = vector.broadcast %180 : f32 to vector<8x128xf32>
    %182 = arith.mulf %32, %181 : vector<8x128xf32>
    %183 = arith.addf %179, %182 : vector<8x128xf32>
    %c62 = arith.constant 62 : index
    %184 = memref.load %arg1[%c62] : memref<251xf32, #tpu.memory_space<smem>>
    %185 = vector.broadcast %184 : f32 to vector<8x128xf32>
    %186 = arith.mulf %40, %185 : vector<8x128xf32>
    %187 = arith.addf %183, %186 : vector<8x128xf32>
    %c72 = arith.constant 72 : index
    %188 = memref.load %arg1[%c72] : memref<251xf32, #tpu.memory_space<smem>>
    %189 = vector.broadcast %188 : f32 to vector<8x128xf32>
    %190 = arith.mulf %48, %189 : vector<8x128xf32>
    %191 = arith.addf %187, %190 : vector<8x128xf32>
    %c82 = arith.constant 82 : index
    %192 = memref.load %arg1[%c82] : memref<251xf32, #tpu.memory_space<smem>>
    %193 = vector.broadcast %192 : f32 to vector<8x128xf32>
    %194 = arith.mulf %56, %193 : vector<8x128xf32>
    %195 = arith.addf %191, %194 : vector<8x128xf32>
    %c92 = arith.constant 92 : index
    %196 = memref.load %arg1[%c92] : memref<251xf32, #tpu.memory_space<smem>>
    %197 = vector.broadcast %196 : f32 to vector<8x128xf32>
    %198 = arith.mulf %64, %197 : vector<8x128xf32>
    %199 = arith.addf %195, %198 : vector<8x128xf32>
    %c102 = arith.constant 102 : index
    %200 = memref.load %arg1[%c102] : memref<251xf32, #tpu.memory_space<smem>>
    %201 = vector.broadcast %200 : f32 to vector<8x128xf32>
    %202 = arith.mulf %72, %201 : vector<8x128xf32>
    %203 = arith.addf %199, %202 : vector<8x128xf32>
    %c112 = arith.constant 112 : index
    %204 = memref.load %arg1[%c112] : memref<251xf32, #tpu.memory_space<smem>>
    %205 = vector.broadcast %204 : f32 to vector<8x128xf32>
    %206 = arith.mulf %80, %205 : vector<8x128xf32>
    %207 = arith.addf %203, %206 : vector<8x128xf32>
    %c122 = arith.constant 122 : index
    %208 = memref.load %arg1[%c122] : memref<251xf32, #tpu.memory_space<smem>>
    %209 = vector.broadcast %208 : f32 to vector<8x128xf32>
    %210 = arith.addf %207, %209 : vector<8x128xf32>
    %cst_13 = arith.constant 0.000000e+00 : f32
    %211 = vector.broadcast %cst_13 : f32 to vector<8x128xf32>
    %212 = arith.maximumf %210, %211 : vector<8x128xf32>
    %c23 = arith.constant 23 : index
    %213 = memref.load %arg1[%c23] : memref<251xf32, #tpu.memory_space<smem>>
    %214 = vector.broadcast %213 : f32 to vector<8x128xf32>
    %215 = arith.mulf %8, %214 : vector<8x128xf32>
    %c33 = arith.constant 33 : index
    %216 = memref.load %arg1[%c33] : memref<251xf32, #tpu.memory_space<smem>>
    %217 = vector.broadcast %216 : f32 to vector<8x128xf32>
    %218 = arith.mulf %16, %217 : vector<8x128xf32>
    %219 = arith.addf %215, %218 : vector<8x128xf32>
    %c43 = arith.constant 43 : index
    %220 = memref.load %arg1[%c43] : memref<251xf32, #tpu.memory_space<smem>>
    %221 = vector.broadcast %220 : f32 to vector<8x128xf32>
    %222 = arith.mulf %24, %221 : vector<8x128xf32>
    %223 = arith.addf %219, %222 : vector<8x128xf32>
    %c53 = arith.constant 53 : index
    %224 = memref.load %arg1[%c53] : memref<251xf32, #tpu.memory_space<smem>>
    %225 = vector.broadcast %224 : f32 to vector<8x128xf32>
    %226 = arith.mulf %32, %225 : vector<8x128xf32>
    %227 = arith.addf %223, %226 : vector<8x128xf32>
    %c63 = arith.constant 63 : index
    %228 = memref.load %arg1[%c63] : memref<251xf32, #tpu.memory_space<smem>>
    %229 = vector.broadcast %228 : f32 to vector<8x128xf32>
    %230 = arith.mulf %40, %229 : vector<8x128xf32>
    %231 = arith.addf %227, %230 : vector<8x128xf32>
    %c73 = arith.constant 73 : index
    %232 = memref.load %arg1[%c73] : memref<251xf32, #tpu.memory_space<smem>>
    %233 = vector.broadcast %232 : f32 to vector<8x128xf32>
    %234 = arith.mulf %48, %233 : vector<8x128xf32>
    %235 = arith.addf %231, %234 : vector<8x128xf32>
    %c83 = arith.constant 83 : index
    %236 = memref.load %arg1[%c83] : memref<251xf32, #tpu.memory_space<smem>>
    %237 = vector.broadcast %236 : f32 to vector<8x128xf32>
    %238 = arith.mulf %56, %237 : vector<8x128xf32>
    %239 = arith.addf %235, %238 : vector<8x128xf32>
    %c93 = arith.constant 93 : index
    %240 = memref.load %arg1[%c93] : memref<251xf32, #tpu.memory_space<smem>>
    %241 = vector.broadcast %240 : f32 to vector<8x128xf32>
    %242 = arith.mulf %64, %241 : vector<8x128xf32>
    %243 = arith.addf %239, %242 : vector<8x128xf32>
    %c103 = arith.constant 103 : index
    %244 = memref.load %arg1[%c103] : memref<251xf32, #tpu.memory_space<smem>>
    %245 = vector.broadcast %244 : f32 to vector<8x128xf32>
    %246 = arith.mulf %72, %245 : vector<8x128xf32>
    %247 = arith.addf %243, %246 : vector<8x128xf32>
    %c113 = arith.constant 113 : index
    %248 = memref.load %arg1[%c113] : memref<251xf32, #tpu.memory_space<smem>>
    %249 = vector.broadcast %248 : f32 to vector<8x128xf32>
    %250 = arith.mulf %80, %249 : vector<8x128xf32>
    %251 = arith.addf %247, %250 : vector<8x128xf32>
    %c123 = arith.constant 123 : index
    %252 = memref.load %arg1[%c123] : memref<251xf32, #tpu.memory_space<smem>>
    %253 = vector.broadcast %252 : f32 to vector<8x128xf32>
    %254 = arith.addf %251, %253 : vector<8x128xf32>
    %cst_14 = arith.constant 0.000000e+00 : f32
    %255 = vector.broadcast %cst_14 : f32 to vector<8x128xf32>
    %256 = arith.maximumf %254, %255 : vector<8x128xf32>
    %c24 = arith.constant 24 : index
    %257 = memref.load %arg1[%c24] : memref<251xf32, #tpu.memory_space<smem>>
    %258 = vector.broadcast %257 : f32 to vector<8x128xf32>
    %259 = arith.mulf %8, %258 : vector<8x128xf32>
    %c34 = arith.constant 34 : index
    %260 = memref.load %arg1[%c34] : memref<251xf32, #tpu.memory_space<smem>>
    %261 = vector.broadcast %260 : f32 to vector<8x128xf32>
    %262 = arith.mulf %16, %261 : vector<8x128xf32>
    %263 = arith.addf %259, %262 : vector<8x128xf32>
    %c44 = arith.constant 44 : index
    %264 = memref.load %arg1[%c44] : memref<251xf32, #tpu.memory_space<smem>>
    %265 = vector.broadcast %264 : f32 to vector<8x128xf32>
    %266 = arith.mulf %24, %265 : vector<8x128xf32>
    %267 = arith.addf %263, %266 : vector<8x128xf32>
    %c54 = arith.constant 54 : index
    %268 = memref.load %arg1[%c54] : memref<251xf32, #tpu.memory_space<smem>>
    %269 = vector.broadcast %268 : f32 to vector<8x128xf32>
    %270 = arith.mulf %32, %269 : vector<8x128xf32>
    %271 = arith.addf %267, %270 : vector<8x128xf32>
    %c64 = arith.constant 64 : index
    %272 = memref.load %arg1[%c64] : memref<251xf32, #tpu.memory_space<smem>>
    %273 = vector.broadcast %272 : f32 to vector<8x128xf32>
    %274 = arith.mulf %40, %273 : vector<8x128xf32>
    %275 = arith.addf %271, %274 : vector<8x128xf32>
    %c74 = arith.constant 74 : index
    %276 = memref.load %arg1[%c74] : memref<251xf32, #tpu.memory_space<smem>>
    %277 = vector.broadcast %276 : f32 to vector<8x128xf32>
    %278 = arith.mulf %48, %277 : vector<8x128xf32>
    %279 = arith.addf %275, %278 : vector<8x128xf32>
    %c84 = arith.constant 84 : index
    %280 = memref.load %arg1[%c84] : memref<251xf32, #tpu.memory_space<smem>>
    %281 = vector.broadcast %280 : f32 to vector<8x128xf32>
    %282 = arith.mulf %56, %281 : vector<8x128xf32>
    %283 = arith.addf %279, %282 : vector<8x128xf32>
    %c94 = arith.constant 94 : index
    %284 = memref.load %arg1[%c94] : memref<251xf32, #tpu.memory_space<smem>>
    %285 = vector.broadcast %284 : f32 to vector<8x128xf32>
    %286 = arith.mulf %64, %285 : vector<8x128xf32>
    %287 = arith.addf %283, %286 : vector<8x128xf32>
    %c104 = arith.constant 104 : index
    %288 = memref.load %arg1[%c104] : memref<251xf32, #tpu.memory_space<smem>>
    %289 = vector.broadcast %288 : f32 to vector<8x128xf32>
    %290 = arith.mulf %72, %289 : vector<8x128xf32>
    %291 = arith.addf %287, %290 : vector<8x128xf32>
    %c114 = arith.constant 114 : index
    %292 = memref.load %arg1[%c114] : memref<251xf32, #tpu.memory_space<smem>>
    %293 = vector.broadcast %292 : f32 to vector<8x128xf32>
    %294 = arith.mulf %80, %293 : vector<8x128xf32>
    %295 = arith.addf %291, %294 : vector<8x128xf32>
    %c124 = arith.constant 124 : index
    %296 = memref.load %arg1[%c124] : memref<251xf32, #tpu.memory_space<smem>>
    %297 = vector.broadcast %296 : f32 to vector<8x128xf32>
    %298 = arith.addf %295, %297 : vector<8x128xf32>
    %cst_15 = arith.constant 0.000000e+00 : f32
    %299 = vector.broadcast %cst_15 : f32 to vector<8x128xf32>
    %300 = arith.maximumf %298, %299 : vector<8x128xf32>
    %c25 = arith.constant 25 : index
    %301 = memref.load %arg1[%c25] : memref<251xf32, #tpu.memory_space<smem>>
    %302 = vector.broadcast %301 : f32 to vector<8x128xf32>
    %303 = arith.mulf %8, %302 : vector<8x128xf32>
    %c35 = arith.constant 35 : index
    %304 = memref.load %arg1[%c35] : memref<251xf32, #tpu.memory_space<smem>>
    %305 = vector.broadcast %304 : f32 to vector<8x128xf32>
    %306 = arith.mulf %16, %305 : vector<8x128xf32>
    %307 = arith.addf %303, %306 : vector<8x128xf32>
    %c45 = arith.constant 45 : index
    %308 = memref.load %arg1[%c45] : memref<251xf32, #tpu.memory_space<smem>>
    %309 = vector.broadcast %308 : f32 to vector<8x128xf32>
    %310 = arith.mulf %24, %309 : vector<8x128xf32>
    %311 = arith.addf %307, %310 : vector<8x128xf32>
    %c55 = arith.constant 55 : index
    %312 = memref.load %arg1[%c55] : memref<251xf32, #tpu.memory_space<smem>>
    %313 = vector.broadcast %312 : f32 to vector<8x128xf32>
    %314 = arith.mulf %32, %313 : vector<8x128xf32>
    %315 = arith.addf %311, %314 : vector<8x128xf32>
    %c65 = arith.constant 65 : index
    %316 = memref.load %arg1[%c65] : memref<251xf32, #tpu.memory_space<smem>>
    %317 = vector.broadcast %316 : f32 to vector<8x128xf32>
    %318 = arith.mulf %40, %317 : vector<8x128xf32>
    %319 = arith.addf %315, %318 : vector<8x128xf32>
    %c75 = arith.constant 75 : index
    %320 = memref.load %arg1[%c75] : memref<251xf32, #tpu.memory_space<smem>>
    %321 = vector.broadcast %320 : f32 to vector<8x128xf32>
    %322 = arith.mulf %48, %321 : vector<8x128xf32>
    %323 = arith.addf %319, %322 : vector<8x128xf32>
    %c85 = arith.constant 85 : index
    %324 = memref.load %arg1[%c85] : memref<251xf32, #tpu.memory_space<smem>>
    %325 = vector.broadcast %324 : f32 to vector<8x128xf32>
    %326 = arith.mulf %56, %325 : vector<8x128xf32>
    %327 = arith.addf %323, %326 : vector<8x128xf32>
    %c95 = arith.constant 95 : index
    %328 = memref.load %arg1[%c95] : memref<251xf32, #tpu.memory_space<smem>>
    %329 = vector.broadcast %328 : f32 to vector<8x128xf32>
    %330 = arith.mulf %64, %329 : vector<8x128xf32>
    %331 = arith.addf %327, %330 : vector<8x128xf32>
    %c105 = arith.constant 105 : index
    %332 = memref.load %arg1[%c105] : memref<251xf32, #tpu.memory_space<smem>>
    %333 = vector.broadcast %332 : f32 to vector<8x128xf32>
    %334 = arith.mulf %72, %333 : vector<8x128xf32>
    %335 = arith.addf %331, %334 : vector<8x128xf32>
    %c115 = arith.constant 115 : index
    %336 = memref.load %arg1[%c115] : memref<251xf32, #tpu.memory_space<smem>>
    %337 = vector.broadcast %336 : f32 to vector<8x128xf32>
    %338 = arith.mulf %80, %337 : vector<8x128xf32>
    %339 = arith.addf %335, %338 : vector<8x128xf32>
    %c125 = arith.constant 125 : index
    %340 = memref.load %arg1[%c125] : memref<251xf32, #tpu.memory_space<smem>>
    %341 = vector.broadcast %340 : f32 to vector<8x128xf32>
    %342 = arith.addf %339, %341 : vector<8x128xf32>
    %cst_16 = arith.constant 0.000000e+00 : f32
    %343 = vector.broadcast %cst_16 : f32 to vector<8x128xf32>
    %344 = arith.maximumf %342, %343 : vector<8x128xf32>
    %c26 = arith.constant 26 : index
    %345 = memref.load %arg1[%c26] : memref<251xf32, #tpu.memory_space<smem>>
    %346 = vector.broadcast %345 : f32 to vector<8x128xf32>
    %347 = arith.mulf %8, %346 : vector<8x128xf32>
    %c36 = arith.constant 36 : index
    %348 = memref.load %arg1[%c36] : memref<251xf32, #tpu.memory_space<smem>>
    %349 = vector.broadcast %348 : f32 to vector<8x128xf32>
    %350 = arith.mulf %16, %349 : vector<8x128xf32>
    %351 = arith.addf %347, %350 : vector<8x128xf32>
    %c46 = arith.constant 46 : index
    %352 = memref.load %arg1[%c46] : memref<251xf32, #tpu.memory_space<smem>>
    %353 = vector.broadcast %352 : f32 to vector<8x128xf32>
    %354 = arith.mulf %24, %353 : vector<8x128xf32>
    %355 = arith.addf %351, %354 : vector<8x128xf32>
    %c56 = arith.constant 56 : index
    %356 = memref.load %arg1[%c56] : memref<251xf32, #tpu.memory_space<smem>>
    %357 = vector.broadcast %356 : f32 to vector<8x128xf32>
    %358 = arith.mulf %32, %357 : vector<8x128xf32>
    %359 = arith.addf %355, %358 : vector<8x128xf32>
    %c66 = arith.constant 66 : index
    %360 = memref.load %arg1[%c66] : memref<251xf32, #tpu.memory_space<smem>>
    %361 = vector.broadcast %360 : f32 to vector<8x128xf32>
    %362 = arith.mulf %40, %361 : vector<8x128xf32>
    %363 = arith.addf %359, %362 : vector<8x128xf32>
    %c76 = arith.constant 76 : index
    %364 = memref.load %arg1[%c76] : memref<251xf32, #tpu.memory_space<smem>>
    %365 = vector.broadcast %364 : f32 to vector<8x128xf32>
    %366 = arith.mulf %48, %365 : vector<8x128xf32>
    %367 = arith.addf %363, %366 : vector<8x128xf32>
    %c86 = arith.constant 86 : index
    %368 = memref.load %arg1[%c86] : memref<251xf32, #tpu.memory_space<smem>>
    %369 = vector.broadcast %368 : f32 to vector<8x128xf32>
    %370 = arith.mulf %56, %369 : vector<8x128xf32>
    %371 = arith.addf %367, %370 : vector<8x128xf32>
    %c96 = arith.constant 96 : index
    %372 = memref.load %arg1[%c96] : memref<251xf32, #tpu.memory_space<smem>>
    %373 = vector.broadcast %372 : f32 to vector<8x128xf32>
    %374 = arith.mulf %64, %373 : vector<8x128xf32>
    %375 = arith.addf %371, %374 : vector<8x128xf32>
    %c106 = arith.constant 106 : index
    %376 = memref.load %arg1[%c106] : memref<251xf32, #tpu.memory_space<smem>>
    %377 = vector.broadcast %376 : f32 to vector<8x128xf32>
    %378 = arith.mulf %72, %377 : vector<8x128xf32>
    %379 = arith.addf %375, %378 : vector<8x128xf32>
    %c116 = arith.constant 116 : index
    %380 = memref.load %arg1[%c116] : memref<251xf32, #tpu.memory_space<smem>>
    %381 = vector.broadcast %380 : f32 to vector<8x128xf32>
    %382 = arith.mulf %80, %381 : vector<8x128xf32>
    %383 = arith.addf %379, %382 : vector<8x128xf32>
    %c126 = arith.constant 126 : index
    %384 = memref.load %arg1[%c126] : memref<251xf32, #tpu.memory_space<smem>>
    %385 = vector.broadcast %384 : f32 to vector<8x128xf32>
    %386 = arith.addf %383, %385 : vector<8x128xf32>
    %cst_17 = arith.constant 0.000000e+00 : f32
    %387 = vector.broadcast %cst_17 : f32 to vector<8x128xf32>
    %388 = arith.maximumf %386, %387 : vector<8x128xf32>
    %c27 = arith.constant 27 : index
    %389 = memref.load %arg1[%c27] : memref<251xf32, #tpu.memory_space<smem>>
    %390 = vector.broadcast %389 : f32 to vector<8x128xf32>
    %391 = arith.mulf %8, %390 : vector<8x128xf32>
    %c37 = arith.constant 37 : index
    %392 = memref.load %arg1[%c37] : memref<251xf32, #tpu.memory_space<smem>>
    %393 = vector.broadcast %392 : f32 to vector<8x128xf32>
    %394 = arith.mulf %16, %393 : vector<8x128xf32>
    %395 = arith.addf %391, %394 : vector<8x128xf32>
    %c47 = arith.constant 47 : index
    %396 = memref.load %arg1[%c47] : memref<251xf32, #tpu.memory_space<smem>>
    %397 = vector.broadcast %396 : f32 to vector<8x128xf32>
    %398 = arith.mulf %24, %397 : vector<8x128xf32>
    %399 = arith.addf %395, %398 : vector<8x128xf32>
    %c57 = arith.constant 57 : index
    %400 = memref.load %arg1[%c57] : memref<251xf32, #tpu.memory_space<smem>>
    %401 = vector.broadcast %400 : f32 to vector<8x128xf32>
    %402 = arith.mulf %32, %401 : vector<8x128xf32>
    %403 = arith.addf %399, %402 : vector<8x128xf32>
    %c67 = arith.constant 67 : index
    %404 = memref.load %arg1[%c67] : memref<251xf32, #tpu.memory_space<smem>>
    %405 = vector.broadcast %404 : f32 to vector<8x128xf32>
    %406 = arith.mulf %40, %405 : vector<8x128xf32>
    %407 = arith.addf %403, %406 : vector<8x128xf32>
    %c77 = arith.constant 77 : index
    %408 = memref.load %arg1[%c77] : memref<251xf32, #tpu.memory_space<smem>>
    %409 = vector.broadcast %408 : f32 to vector<8x128xf32>
    %410 = arith.mulf %48, %409 : vector<8x128xf32>
    %411 = arith.addf %407, %410 : vector<8x128xf32>
    %c87 = arith.constant 87 : index
    %412 = memref.load %arg1[%c87] : memref<251xf32, #tpu.memory_space<smem>>
    %413 = vector.broadcast %412 : f32 to vector<8x128xf32>
    %414 = arith.mulf %56, %413 : vector<8x128xf32>
    %415 = arith.addf %411, %414 : vector<8x128xf32>
    %c97 = arith.constant 97 : index
    %416 = memref.load %arg1[%c97] : memref<251xf32, #tpu.memory_space<smem>>
    %417 = vector.broadcast %416 : f32 to vector<8x128xf32>
    %418 = arith.mulf %64, %417 : vector<8x128xf32>
    %419 = arith.addf %415, %418 : vector<8x128xf32>
    %c107 = arith.constant 107 : index
    %420 = memref.load %arg1[%c107] : memref<251xf32, #tpu.memory_space<smem>>
    %421 = vector.broadcast %420 : f32 to vector<8x128xf32>
    %422 = arith.mulf %72, %421 : vector<8x128xf32>
    %423 = arith.addf %419, %422 : vector<8x128xf32>
    %c117 = arith.constant 117 : index
    %424 = memref.load %arg1[%c117] : memref<251xf32, #tpu.memory_space<smem>>
    %425 = vector.broadcast %424 : f32 to vector<8x128xf32>
    %426 = arith.mulf %80, %425 : vector<8x128xf32>
    %427 = arith.addf %423, %426 : vector<8x128xf32>
    %c127 = arith.constant 127 : index
    %428 = memref.load %arg1[%c127] : memref<251xf32, #tpu.memory_space<smem>>
    %429 = vector.broadcast %428 : f32 to vector<8x128xf32>
    %430 = arith.addf %427, %429 : vector<8x128xf32>
    %cst_18 = arith.constant 0.000000e+00 : f32
    %431 = vector.broadcast %cst_18 : f32 to vector<8x128xf32>
    %432 = arith.maximumf %430, %431 : vector<8x128xf32>
    %c28 = arith.constant 28 : index
    %433 = memref.load %arg1[%c28] : memref<251xf32, #tpu.memory_space<smem>>
    %434 = vector.broadcast %433 : f32 to vector<8x128xf32>
    %435 = arith.mulf %8, %434 : vector<8x128xf32>
    %c38 = arith.constant 38 : index
    %436 = memref.load %arg1[%c38] : memref<251xf32, #tpu.memory_space<smem>>
    %437 = vector.broadcast %436 : f32 to vector<8x128xf32>
    %438 = arith.mulf %16, %437 : vector<8x128xf32>
    %439 = arith.addf %435, %438 : vector<8x128xf32>
    %c48 = arith.constant 48 : index
    %440 = memref.load %arg1[%c48] : memref<251xf32, #tpu.memory_space<smem>>
    %441 = vector.broadcast %440 : f32 to vector<8x128xf32>
    %442 = arith.mulf %24, %441 : vector<8x128xf32>
    %443 = arith.addf %439, %442 : vector<8x128xf32>
    %c58 = arith.constant 58 : index
    %444 = memref.load %arg1[%c58] : memref<251xf32, #tpu.memory_space<smem>>
    %445 = vector.broadcast %444 : f32 to vector<8x128xf32>
    %446 = arith.mulf %32, %445 : vector<8x128xf32>
    %447 = arith.addf %443, %446 : vector<8x128xf32>
    %c68 = arith.constant 68 : index
    %448 = memref.load %arg1[%c68] : memref<251xf32, #tpu.memory_space<smem>>
    %449 = vector.broadcast %448 : f32 to vector<8x128xf32>
    %450 = arith.mulf %40, %449 : vector<8x128xf32>
    %451 = arith.addf %447, %450 : vector<8x128xf32>
    %c78 = arith.constant 78 : index
    %452 = memref.load %arg1[%c78] : memref<251xf32, #tpu.memory_space<smem>>
    %453 = vector.broadcast %452 : f32 to vector<8x128xf32>
    %454 = arith.mulf %48, %453 : vector<8x128xf32>
    %455 = arith.addf %451, %454 : vector<8x128xf32>
    %c88 = arith.constant 88 : index
    %456 = memref.load %arg1[%c88] : memref<251xf32, #tpu.memory_space<smem>>
    %457 = vector.broadcast %456 : f32 to vector<8x128xf32>
    %458 = arith.mulf %56, %457 : vector<8x128xf32>
    %459 = arith.addf %455, %458 : vector<8x128xf32>
    %c98 = arith.constant 98 : index
    %460 = memref.load %arg1[%c98] : memref<251xf32, #tpu.memory_space<smem>>
    %461 = vector.broadcast %460 : f32 to vector<8x128xf32>
    %462 = arith.mulf %64, %461 : vector<8x128xf32>
    %463 = arith.addf %459, %462 : vector<8x128xf32>
    %c108 = arith.constant 108 : index
    %464 = memref.load %arg1[%c108] : memref<251xf32, #tpu.memory_space<smem>>
    %465 = vector.broadcast %464 : f32 to vector<8x128xf32>
    %466 = arith.mulf %72, %465 : vector<8x128xf32>
    %467 = arith.addf %463, %466 : vector<8x128xf32>
    %c118 = arith.constant 118 : index
    %468 = memref.load %arg1[%c118] : memref<251xf32, #tpu.memory_space<smem>>
    %469 = vector.broadcast %468 : f32 to vector<8x128xf32>
    %470 = arith.mulf %80, %469 : vector<8x128xf32>
    %471 = arith.addf %467, %470 : vector<8x128xf32>
    %c128 = arith.constant 128 : index
    %472 = memref.load %arg1[%c128] : memref<251xf32, #tpu.memory_space<smem>>
    %473 = vector.broadcast %472 : f32 to vector<8x128xf32>
    %474 = arith.addf %471, %473 : vector<8x128xf32>
    %cst_19 = arith.constant 0.000000e+00 : f32
    %475 = vector.broadcast %cst_19 : f32 to vector<8x128xf32>
    %476 = arith.maximumf %474, %475 : vector<8x128xf32>
    %c29 = arith.constant 29 : index
    %477 = memref.load %arg1[%c29] : memref<251xf32, #tpu.memory_space<smem>>
    %478 = vector.broadcast %477 : f32 to vector<8x128xf32>
    %479 = arith.mulf %8, %478 : vector<8x128xf32>
    %c39 = arith.constant 39 : index
    %480 = memref.load %arg1[%c39] : memref<251xf32, #tpu.memory_space<smem>>
    %481 = vector.broadcast %480 : f32 to vector<8x128xf32>
    %482 = arith.mulf %16, %481 : vector<8x128xf32>
    %483 = arith.addf %479, %482 : vector<8x128xf32>
    %c49 = arith.constant 49 : index
    %484 = memref.load %arg1[%c49] : memref<251xf32, #tpu.memory_space<smem>>
    %485 = vector.broadcast %484 : f32 to vector<8x128xf32>
    %486 = arith.mulf %24, %485 : vector<8x128xf32>
    %487 = arith.addf %483, %486 : vector<8x128xf32>
    %c59 = arith.constant 59 : index
    %488 = memref.load %arg1[%c59] : memref<251xf32, #tpu.memory_space<smem>>
    %489 = vector.broadcast %488 : f32 to vector<8x128xf32>
    %490 = arith.mulf %32, %489 : vector<8x128xf32>
    %491 = arith.addf %487, %490 : vector<8x128xf32>
    %c69 = arith.constant 69 : index
    %492 = memref.load %arg1[%c69] : memref<251xf32, #tpu.memory_space<smem>>
    %493 = vector.broadcast %492 : f32 to vector<8x128xf32>
    %494 = arith.mulf %40, %493 : vector<8x128xf32>
    %495 = arith.addf %491, %494 : vector<8x128xf32>
    %c79 = arith.constant 79 : index
    %496 = memref.load %arg1[%c79] : memref<251xf32, #tpu.memory_space<smem>>
    %497 = vector.broadcast %496 : f32 to vector<8x128xf32>
    %498 = arith.mulf %48, %497 : vector<8x128xf32>
    %499 = arith.addf %495, %498 : vector<8x128xf32>
    %c89 = arith.constant 89 : index
    %500 = memref.load %arg1[%c89] : memref<251xf32, #tpu.memory_space<smem>>
    %501 = vector.broadcast %500 : f32 to vector<8x128xf32>
    %502 = arith.mulf %56, %501 : vector<8x128xf32>
    %503 = arith.addf %499, %502 : vector<8x128xf32>
    %c99 = arith.constant 99 : index
    %504 = memref.load %arg1[%c99] : memref<251xf32, #tpu.memory_space<smem>>
    %505 = vector.broadcast %504 : f32 to vector<8x128xf32>
    %506 = arith.mulf %64, %505 : vector<8x128xf32>
    %507 = arith.addf %503, %506 : vector<8x128xf32>
    %c109 = arith.constant 109 : index
    %508 = memref.load %arg1[%c109] : memref<251xf32, #tpu.memory_space<smem>>
    %509 = vector.broadcast %508 : f32 to vector<8x128xf32>
    %510 = arith.mulf %72, %509 : vector<8x128xf32>
    %511 = arith.addf %507, %510 : vector<8x128xf32>
    %c119 = arith.constant 119 : index
    %512 = memref.load %arg1[%c119] : memref<251xf32, #tpu.memory_space<smem>>
    %513 = vector.broadcast %512 : f32 to vector<8x128xf32>
    %514 = arith.mulf %80, %513 : vector<8x128xf32>
    %515 = arith.addf %511, %514 : vector<8x128xf32>
    %c129 = arith.constant 129 : index
    %516 = memref.load %arg1[%c129] : memref<251xf32, #tpu.memory_space<smem>>
    %517 = vector.broadcast %516 : f32 to vector<8x128xf32>
    %518 = arith.addf %515, %517 : vector<8x128xf32>
    %cst_20 = arith.constant 0.000000e+00 : f32
    %519 = vector.broadcast %cst_20 : f32 to vector<8x128xf32>
    %520 = arith.maximumf %518, %519 : vector<8x128xf32>
    %c130 = arith.constant 130 : index
    %521 = memref.load %arg1[%c130] : memref<251xf32, #tpu.memory_space<smem>>
    %522 = vector.broadcast %521 : f32 to vector<8x128xf32>
    %523 = arith.mulf %124, %522 : vector<8x128xf32>
    %c140 = arith.constant 140 : index
    %524 = memref.load %arg1[%c140] : memref<251xf32, #tpu.memory_space<smem>>
    %525 = vector.broadcast %524 : f32 to vector<8x128xf32>
    %526 = arith.mulf %168, %525 : vector<8x128xf32>
    %527 = arith.addf %523, %526 : vector<8x128xf32>
    %c150 = arith.constant 150 : index
    %528 = memref.load %arg1[%c150] : memref<251xf32, #tpu.memory_space<smem>>
    %529 = vector.broadcast %528 : f32 to vector<8x128xf32>
    %530 = arith.mulf %212, %529 : vector<8x128xf32>
    %531 = arith.addf %527, %530 : vector<8x128xf32>
    %c160 = arith.constant 160 : index
    %532 = memref.load %arg1[%c160] : memref<251xf32, #tpu.memory_space<smem>>
    %533 = vector.broadcast %532 : f32 to vector<8x128xf32>
    %534 = arith.mulf %256, %533 : vector<8x128xf32>
    %535 = arith.addf %531, %534 : vector<8x128xf32>
    %c170 = arith.constant 170 : index
    %536 = memref.load %arg1[%c170] : memref<251xf32, #tpu.memory_space<smem>>
    %537 = vector.broadcast %536 : f32 to vector<8x128xf32>
    %538 = arith.mulf %300, %537 : vector<8x128xf32>
    %539 = arith.addf %535, %538 : vector<8x128xf32>
    %c180 = arith.constant 180 : index
    %540 = memref.load %arg1[%c180] : memref<251xf32, #tpu.memory_space<smem>>
    %541 = vector.broadcast %540 : f32 to vector<8x128xf32>
    %542 = arith.mulf %344, %541 : vector<8x128xf32>
    %543 = arith.addf %539, %542 : vector<8x128xf32>
    %c190 = arith.constant 190 : index
    %544 = memref.load %arg1[%c190] : memref<251xf32, #tpu.memory_space<smem>>
    %545 = vector.broadcast %544 : f32 to vector<8x128xf32>
    %546 = arith.mulf %388, %545 : vector<8x128xf32>
    %547 = arith.addf %543, %546 : vector<8x128xf32>
    %c200 = arith.constant 200 : index
    %548 = memref.load %arg1[%c200] : memref<251xf32, #tpu.memory_space<smem>>
    %549 = vector.broadcast %548 : f32 to vector<8x128xf32>
    %550 = arith.mulf %432, %549 : vector<8x128xf32>
    %551 = arith.addf %547, %550 : vector<8x128xf32>
    %c210 = arith.constant 210 : index
    %552 = memref.load %arg1[%c210] : memref<251xf32, #tpu.memory_space<smem>>
    %553 = vector.broadcast %552 : f32 to vector<8x128xf32>
    %554 = arith.mulf %476, %553 : vector<8x128xf32>
    %555 = arith.addf %551, %554 : vector<8x128xf32>
    %c220 = arith.constant 220 : index
    %556 = memref.load %arg1[%c220] : memref<251xf32, #tpu.memory_space<smem>>
    %557 = vector.broadcast %556 : f32 to vector<8x128xf32>
    %558 = arith.mulf %520, %557 : vector<8x128xf32>
    %559 = arith.addf %555, %558 : vector<8x128xf32>
    %c230 = arith.constant 230 : index
    %560 = memref.load %arg1[%c230] : memref<251xf32, #tpu.memory_space<smem>>
    %561 = vector.broadcast %560 : f32 to vector<8x128xf32>
    %562 = arith.addf %559, %561 : vector<8x128xf32>
    %cst_21 = arith.constant 0.000000e+00 : f32
    %563 = vector.broadcast %cst_21 : f32 to vector<8x128xf32>
    %564 = arith.maximumf %562, %563 : vector<8x128xf32>
    %c131 = arith.constant 131 : index
    %565 = memref.load %arg1[%c131] : memref<251xf32, #tpu.memory_space<smem>>
    %566 = vector.broadcast %565 : f32 to vector<8x128xf32>
    %567 = arith.mulf %124, %566 : vector<8x128xf32>
    %c141 = arith.constant 141 : index
    %568 = memref.load %arg1[%c141] : memref<251xf32, #tpu.memory_space<smem>>
    %569 = vector.broadcast %568 : f32 to vector<8x128xf32>
    %570 = arith.mulf %168, %569 : vector<8x128xf32>
    %571 = arith.addf %567, %570 : vector<8x128xf32>
    %c151 = arith.constant 151 : index
    %572 = memref.load %arg1[%c151] : memref<251xf32, #tpu.memory_space<smem>>
    %573 = vector.broadcast %572 : f32 to vector<8x128xf32>
    %574 = arith.mulf %212, %573 : vector<8x128xf32>
    %575 = arith.addf %571, %574 : vector<8x128xf32>
    %c161 = arith.constant 161 : index
    %576 = memref.load %arg1[%c161] : memref<251xf32, #tpu.memory_space<smem>>
    %577 = vector.broadcast %576 : f32 to vector<8x128xf32>
    %578 = arith.mulf %256, %577 : vector<8x128xf32>
    %579 = arith.addf %575, %578 : vector<8x128xf32>
    %c171 = arith.constant 171 : index
    %580 = memref.load %arg1[%c171] : memref<251xf32, #tpu.memory_space<smem>>
    %581 = vector.broadcast %580 : f32 to vector<8x128xf32>
    %582 = arith.mulf %300, %581 : vector<8x128xf32>
    %583 = arith.addf %579, %582 : vector<8x128xf32>
    %c181 = arith.constant 181 : index
    %584 = memref.load %arg1[%c181] : memref<251xf32, #tpu.memory_space<smem>>
    %585 = vector.broadcast %584 : f32 to vector<8x128xf32>
    %586 = arith.mulf %344, %585 : vector<8x128xf32>
    %587 = arith.addf %583, %586 : vector<8x128xf32>
    %c191 = arith.constant 191 : index
    %588 = memref.load %arg1[%c191] : memref<251xf32, #tpu.memory_space<smem>>
    %589 = vector.broadcast %588 : f32 to vector<8x128xf32>
    %590 = arith.mulf %388, %589 : vector<8x128xf32>
    %591 = arith.addf %587, %590 : vector<8x128xf32>
    %c201 = arith.constant 201 : index
    %592 = memref.load %arg1[%c201] : memref<251xf32, #tpu.memory_space<smem>>
    %593 = vector.broadcast %592 : f32 to vector<8x128xf32>
    %594 = arith.mulf %432, %593 : vector<8x128xf32>
    %595 = arith.addf %591, %594 : vector<8x128xf32>
    %c211 = arith.constant 211 : index
    %596 = memref.load %arg1[%c211] : memref<251xf32, #tpu.memory_space<smem>>
    %597 = vector.broadcast %596 : f32 to vector<8x128xf32>
    %598 = arith.mulf %476, %597 : vector<8x128xf32>
    %599 = arith.addf %595, %598 : vector<8x128xf32>
    %c221 = arith.constant 221 : index
    %600 = memref.load %arg1[%c221] : memref<251xf32, #tpu.memory_space<smem>>
    %601 = vector.broadcast %600 : f32 to vector<8x128xf32>
    %602 = arith.mulf %520, %601 : vector<8x128xf32>
    %603 = arith.addf %599, %602 : vector<8x128xf32>
    %c231 = arith.constant 231 : index
    %604 = memref.load %arg1[%c231] : memref<251xf32, #tpu.memory_space<smem>>
    %605 = vector.broadcast %604 : f32 to vector<8x128xf32>
    %606 = arith.addf %603, %605 : vector<8x128xf32>
    %cst_22 = arith.constant 0.000000e+00 : f32
    %607 = vector.broadcast %cst_22 : f32 to vector<8x128xf32>
    %608 = arith.maximumf %606, %607 : vector<8x128xf32>
    %c132 = arith.constant 132 : index
    %609 = memref.load %arg1[%c132] : memref<251xf32, #tpu.memory_space<smem>>
    %610 = vector.broadcast %609 : f32 to vector<8x128xf32>
    %611 = arith.mulf %124, %610 : vector<8x128xf32>
    %c142 = arith.constant 142 : index
    %612 = memref.load %arg1[%c142] : memref<251xf32, #tpu.memory_space<smem>>
    %613 = vector.broadcast %612 : f32 to vector<8x128xf32>
    %614 = arith.mulf %168, %613 : vector<8x128xf32>
    %615 = arith.addf %611, %614 : vector<8x128xf32>
    %c152 = arith.constant 152 : index
    %616 = memref.load %arg1[%c152] : memref<251xf32, #tpu.memory_space<smem>>
    %617 = vector.broadcast %616 : f32 to vector<8x128xf32>
    %618 = arith.mulf %212, %617 : vector<8x128xf32>
    %619 = arith.addf %615, %618 : vector<8x128xf32>
    %c162 = arith.constant 162 : index
    %620 = memref.load %arg1[%c162] : memref<251xf32, #tpu.memory_space<smem>>
    %621 = vector.broadcast %620 : f32 to vector<8x128xf32>
    %622 = arith.mulf %256, %621 : vector<8x128xf32>
    %623 = arith.addf %619, %622 : vector<8x128xf32>
    %c172 = arith.constant 172 : index
    %624 = memref.load %arg1[%c172] : memref<251xf32, #tpu.memory_space<smem>>
    %625 = vector.broadcast %624 : f32 to vector<8x128xf32>
    %626 = arith.mulf %300, %625 : vector<8x128xf32>
    %627 = arith.addf %623, %626 : vector<8x128xf32>
    %c182 = arith.constant 182 : index
    %628 = memref.load %arg1[%c182] : memref<251xf32, #tpu.memory_space<smem>>
    %629 = vector.broadcast %628 : f32 to vector<8x128xf32>
    %630 = arith.mulf %344, %629 : vector<8x128xf32>
    %631 = arith.addf %627, %630 : vector<8x128xf32>
    %c192 = arith.constant 192 : index
    %632 = memref.load %arg1[%c192] : memref<251xf32, #tpu.memory_space<smem>>
    %633 = vector.broadcast %632 : f32 to vector<8x128xf32>
    %634 = arith.mulf %388, %633 : vector<8x128xf32>
    %635 = arith.addf %631, %634 : vector<8x128xf32>
    %c202 = arith.constant 202 : index
    %636 = memref.load %arg1[%c202] : memref<251xf32, #tpu.memory_space<smem>>
    %637 = vector.broadcast %636 : f32 to vector<8x128xf32>
    %638 = arith.mulf %432, %637 : vector<8x128xf32>
    %639 = arith.addf %635, %638 : vector<8x128xf32>
    %c212 = arith.constant 212 : index
    %640 = memref.load %arg1[%c212] : memref<251xf32, #tpu.memory_space<smem>>
    %641 = vector.broadcast %640 : f32 to vector<8x128xf32>
    %642 = arith.mulf %476, %641 : vector<8x128xf32>
    %643 = arith.addf %639, %642 : vector<8x128xf32>
    %c222 = arith.constant 222 : index
    %644 = memref.load %arg1[%c222] : memref<251xf32, #tpu.memory_space<smem>>
    %645 = vector.broadcast %644 : f32 to vector<8x128xf32>
    %646 = arith.mulf %520, %645 : vector<8x128xf32>
    %647 = arith.addf %643, %646 : vector<8x128xf32>
    %c232 = arith.constant 232 : index
    %648 = memref.load %arg1[%c232] : memref<251xf32, #tpu.memory_space<smem>>
    %649 = vector.broadcast %648 : f32 to vector<8x128xf32>
    %650 = arith.addf %647, %649 : vector<8x128xf32>
    %cst_23 = arith.constant 0.000000e+00 : f32
    %651 = vector.broadcast %cst_23 : f32 to vector<8x128xf32>
    %652 = arith.maximumf %650, %651 : vector<8x128xf32>
    %c133 = arith.constant 133 : index
    %653 = memref.load %arg1[%c133] : memref<251xf32, #tpu.memory_space<smem>>
    %654 = vector.broadcast %653 : f32 to vector<8x128xf32>
    %655 = arith.mulf %124, %654 : vector<8x128xf32>
    %c143 = arith.constant 143 : index
    %656 = memref.load %arg1[%c143] : memref<251xf32, #tpu.memory_space<smem>>
    %657 = vector.broadcast %656 : f32 to vector<8x128xf32>
    %658 = arith.mulf %168, %657 : vector<8x128xf32>
    %659 = arith.addf %655, %658 : vector<8x128xf32>
    %c153 = arith.constant 153 : index
    %660 = memref.load %arg1[%c153] : memref<251xf32, #tpu.memory_space<smem>>
    %661 = vector.broadcast %660 : f32 to vector<8x128xf32>
    %662 = arith.mulf %212, %661 : vector<8x128xf32>
    %663 = arith.addf %659, %662 : vector<8x128xf32>
    %c163 = arith.constant 163 : index
    %664 = memref.load %arg1[%c163] : memref<251xf32, #tpu.memory_space<smem>>
    %665 = vector.broadcast %664 : f32 to vector<8x128xf32>
    %666 = arith.mulf %256, %665 : vector<8x128xf32>
    %667 = arith.addf %663, %666 : vector<8x128xf32>
    %c173 = arith.constant 173 : index
    %668 = memref.load %arg1[%c173] : memref<251xf32, #tpu.memory_space<smem>>
    %669 = vector.broadcast %668 : f32 to vector<8x128xf32>
    %670 = arith.mulf %300, %669 : vector<8x128xf32>
    %671 = arith.addf %667, %670 : vector<8x128xf32>
    %c183 = arith.constant 183 : index
    %672 = memref.load %arg1[%c183] : memref<251xf32, #tpu.memory_space<smem>>
    %673 = vector.broadcast %672 : f32 to vector<8x128xf32>
    %674 = arith.mulf %344, %673 : vector<8x128xf32>
    %675 = arith.addf %671, %674 : vector<8x128xf32>
    %c193 = arith.constant 193 : index
    %676 = memref.load %arg1[%c193] : memref<251xf32, #tpu.memory_space<smem>>
    %677 = vector.broadcast %676 : f32 to vector<8x128xf32>
    %678 = arith.mulf %388, %677 : vector<8x128xf32>
    %679 = arith.addf %675, %678 : vector<8x128xf32>
    %c203 = arith.constant 203 : index
    %680 = memref.load %arg1[%c203] : memref<251xf32, #tpu.memory_space<smem>>
    %681 = vector.broadcast %680 : f32 to vector<8x128xf32>
    %682 = arith.mulf %432, %681 : vector<8x128xf32>
    %683 = arith.addf %679, %682 : vector<8x128xf32>
    %c213 = arith.constant 213 : index
    %684 = memref.load %arg1[%c213] : memref<251xf32, #tpu.memory_space<smem>>
    %685 = vector.broadcast %684 : f32 to vector<8x128xf32>
    %686 = arith.mulf %476, %685 : vector<8x128xf32>
    %687 = arith.addf %683, %686 : vector<8x128xf32>
    %c223 = arith.constant 223 : index
    %688 = memref.load %arg1[%c223] : memref<251xf32, #tpu.memory_space<smem>>
    %689 = vector.broadcast %688 : f32 to vector<8x128xf32>
    %690 = arith.mulf %520, %689 : vector<8x128xf32>
    %691 = arith.addf %687, %690 : vector<8x128xf32>
    %c233 = arith.constant 233 : index
    %692 = memref.load %arg1[%c233] : memref<251xf32, #tpu.memory_space<smem>>
    %693 = vector.broadcast %692 : f32 to vector<8x128xf32>
    %694 = arith.addf %691, %693 : vector<8x128xf32>
    %cst_24 = arith.constant 0.000000e+00 : f32
    %695 = vector.broadcast %cst_24 : f32 to vector<8x128xf32>
    %696 = arith.maximumf %694, %695 : vector<8x128xf32>
    %c134 = arith.constant 134 : index
    %697 = memref.load %arg1[%c134] : memref<251xf32, #tpu.memory_space<smem>>
    %698 = vector.broadcast %697 : f32 to vector<8x128xf32>
    %699 = arith.mulf %124, %698 : vector<8x128xf32>
    %c144 = arith.constant 144 : index
    %700 = memref.load %arg1[%c144] : memref<251xf32, #tpu.memory_space<smem>>
    %701 = vector.broadcast %700 : f32 to vector<8x128xf32>
    %702 = arith.mulf %168, %701 : vector<8x128xf32>
    %703 = arith.addf %699, %702 : vector<8x128xf32>
    %c154 = arith.constant 154 : index
    %704 = memref.load %arg1[%c154] : memref<251xf32, #tpu.memory_space<smem>>
    %705 = vector.broadcast %704 : f32 to vector<8x128xf32>
    %706 = arith.mulf %212, %705 : vector<8x128xf32>
    %707 = arith.addf %703, %706 : vector<8x128xf32>
    %c164 = arith.constant 164 : index
    %708 = memref.load %arg1[%c164] : memref<251xf32, #tpu.memory_space<smem>>
    %709 = vector.broadcast %708 : f32 to vector<8x128xf32>
    %710 = arith.mulf %256, %709 : vector<8x128xf32>
    %711 = arith.addf %707, %710 : vector<8x128xf32>
    %c174 = arith.constant 174 : index
    %712 = memref.load %arg1[%c174] : memref<251xf32, #tpu.memory_space<smem>>
    %713 = vector.broadcast %712 : f32 to vector<8x128xf32>
    %714 = arith.mulf %300, %713 : vector<8x128xf32>
    %715 = arith.addf %711, %714 : vector<8x128xf32>
    %c184 = arith.constant 184 : index
    %716 = memref.load %arg1[%c184] : memref<251xf32, #tpu.memory_space<smem>>
    %717 = vector.broadcast %716 : f32 to vector<8x128xf32>
    %718 = arith.mulf %344, %717 : vector<8x128xf32>
    %719 = arith.addf %715, %718 : vector<8x128xf32>
    %c194 = arith.constant 194 : index
    %720 = memref.load %arg1[%c194] : memref<251xf32, #tpu.memory_space<smem>>
    %721 = vector.broadcast %720 : f32 to vector<8x128xf32>
    %722 = arith.mulf %388, %721 : vector<8x128xf32>
    %723 = arith.addf %719, %722 : vector<8x128xf32>
    %c204 = arith.constant 204 : index
    %724 = memref.load %arg1[%c204] : memref<251xf32, #tpu.memory_space<smem>>
    %725 = vector.broadcast %724 : f32 to vector<8x128xf32>
    %726 = arith.mulf %432, %725 : vector<8x128xf32>
    %727 = arith.addf %723, %726 : vector<8x128xf32>
    %c214 = arith.constant 214 : index
    %728 = memref.load %arg1[%c214] : memref<251xf32, #tpu.memory_space<smem>>
    %729 = vector.broadcast %728 : f32 to vector<8x128xf32>
    %730 = arith.mulf %476, %729 : vector<8x128xf32>
    %731 = arith.addf %727, %730 : vector<8x128xf32>
    %c224 = arith.constant 224 : index
    %732 = memref.load %arg1[%c224] : memref<251xf32, #tpu.memory_space<smem>>
    %733 = vector.broadcast %732 : f32 to vector<8x128xf32>
    %734 = arith.mulf %520, %733 : vector<8x128xf32>
    %735 = arith.addf %731, %734 : vector<8x128xf32>
    %c234 = arith.constant 234 : index
    %736 = memref.load %arg1[%c234] : memref<251xf32, #tpu.memory_space<smem>>
    %737 = vector.broadcast %736 : f32 to vector<8x128xf32>
    %738 = arith.addf %735, %737 : vector<8x128xf32>
    %cst_25 = arith.constant 0.000000e+00 : f32
    %739 = vector.broadcast %cst_25 : f32 to vector<8x128xf32>
    %740 = arith.maximumf %738, %739 : vector<8x128xf32>
    %c135 = arith.constant 135 : index
    %741 = memref.load %arg1[%c135] : memref<251xf32, #tpu.memory_space<smem>>
    %742 = vector.broadcast %741 : f32 to vector<8x128xf32>
    %743 = arith.mulf %124, %742 : vector<8x128xf32>
    %c145 = arith.constant 145 : index
    %744 = memref.load %arg1[%c145] : memref<251xf32, #tpu.memory_space<smem>>
    %745 = vector.broadcast %744 : f32 to vector<8x128xf32>
    %746 = arith.mulf %168, %745 : vector<8x128xf32>
    %747 = arith.addf %743, %746 : vector<8x128xf32>
    %c155 = arith.constant 155 : index
    %748 = memref.load %arg1[%c155] : memref<251xf32, #tpu.memory_space<smem>>
    %749 = vector.broadcast %748 : f32 to vector<8x128xf32>
    %750 = arith.mulf %212, %749 : vector<8x128xf32>
    %751 = arith.addf %747, %750 : vector<8x128xf32>
    %c165 = arith.constant 165 : index
    %752 = memref.load %arg1[%c165] : memref<251xf32, #tpu.memory_space<smem>>
    %753 = vector.broadcast %752 : f32 to vector<8x128xf32>
    %754 = arith.mulf %256, %753 : vector<8x128xf32>
    %755 = arith.addf %751, %754 : vector<8x128xf32>
    %c175 = arith.constant 175 : index
    %756 = memref.load %arg1[%c175] : memref<251xf32, #tpu.memory_space<smem>>
    %757 = vector.broadcast %756 : f32 to vector<8x128xf32>
    %758 = arith.mulf %300, %757 : vector<8x128xf32>
    %759 = arith.addf %755, %758 : vector<8x128xf32>
    %c185 = arith.constant 185 : index
    %760 = memref.load %arg1[%c185] : memref<251xf32, #tpu.memory_space<smem>>
    %761 = vector.broadcast %760 : f32 to vector<8x128xf32>
    %762 = arith.mulf %344, %761 : vector<8x128xf32>
    %763 = arith.addf %759, %762 : vector<8x128xf32>
    %c195 = arith.constant 195 : index
    %764 = memref.load %arg1[%c195] : memref<251xf32, #tpu.memory_space<smem>>
    %765 = vector.broadcast %764 : f32 to vector<8x128xf32>
    %766 = arith.mulf %388, %765 : vector<8x128xf32>
    %767 = arith.addf %763, %766 : vector<8x128xf32>
    %c205 = arith.constant 205 : index
    %768 = memref.load %arg1[%c205] : memref<251xf32, #tpu.memory_space<smem>>
    %769 = vector.broadcast %768 : f32 to vector<8x128xf32>
    %770 = arith.mulf %432, %769 : vector<8x128xf32>
    %771 = arith.addf %767, %770 : vector<8x128xf32>
    %c215 = arith.constant 215 : index
    %772 = memref.load %arg1[%c215] : memref<251xf32, #tpu.memory_space<smem>>
    %773 = vector.broadcast %772 : f32 to vector<8x128xf32>
    %774 = arith.mulf %476, %773 : vector<8x128xf32>
    %775 = arith.addf %771, %774 : vector<8x128xf32>
    %c225 = arith.constant 225 : index
    %776 = memref.load %arg1[%c225] : memref<251xf32, #tpu.memory_space<smem>>
    %777 = vector.broadcast %776 : f32 to vector<8x128xf32>
    %778 = arith.mulf %520, %777 : vector<8x128xf32>
    %779 = arith.addf %775, %778 : vector<8x128xf32>
    %c235 = arith.constant 235 : index
    %780 = memref.load %arg1[%c235] : memref<251xf32, #tpu.memory_space<smem>>
    %781 = vector.broadcast %780 : f32 to vector<8x128xf32>
    %782 = arith.addf %779, %781 : vector<8x128xf32>
    %cst_26 = arith.constant 0.000000e+00 : f32
    %783 = vector.broadcast %cst_26 : f32 to vector<8x128xf32>
    %784 = arith.maximumf %782, %783 : vector<8x128xf32>
    %c136 = arith.constant 136 : index
    %785 = memref.load %arg1[%c136] : memref<251xf32, #tpu.memory_space<smem>>
    %786 = vector.broadcast %785 : f32 to vector<8x128xf32>
    %787 = arith.mulf %124, %786 : vector<8x128xf32>
    %c146 = arith.constant 146 : index
    %788 = memref.load %arg1[%c146] : memref<251xf32, #tpu.memory_space<smem>>
    %789 = vector.broadcast %788 : f32 to vector<8x128xf32>
    %790 = arith.mulf %168, %789 : vector<8x128xf32>
    %791 = arith.addf %787, %790 : vector<8x128xf32>
    %c156 = arith.constant 156 : index
    %792 = memref.load %arg1[%c156] : memref<251xf32, #tpu.memory_space<smem>>
    %793 = vector.broadcast %792 : f32 to vector<8x128xf32>
    %794 = arith.mulf %212, %793 : vector<8x128xf32>
    %795 = arith.addf %791, %794 : vector<8x128xf32>
    %c166 = arith.constant 166 : index
    %796 = memref.load %arg1[%c166] : memref<251xf32, #tpu.memory_space<smem>>
    %797 = vector.broadcast %796 : f32 to vector<8x128xf32>
    %798 = arith.mulf %256, %797 : vector<8x128xf32>
    %799 = arith.addf %795, %798 : vector<8x128xf32>
    %c176 = arith.constant 176 : index
    %800 = memref.load %arg1[%c176] : memref<251xf32, #tpu.memory_space<smem>>
    %801 = vector.broadcast %800 : f32 to vector<8x128xf32>
    %802 = arith.mulf %300, %801 : vector<8x128xf32>
    %803 = arith.addf %799, %802 : vector<8x128xf32>
    %c186 = arith.constant 186 : index
    %804 = memref.load %arg1[%c186] : memref<251xf32, #tpu.memory_space<smem>>
    %805 = vector.broadcast %804 : f32 to vector<8x128xf32>
    %806 = arith.mulf %344, %805 : vector<8x128xf32>
    %807 = arith.addf %803, %806 : vector<8x128xf32>
    %c196 = arith.constant 196 : index
    %808 = memref.load %arg1[%c196] : memref<251xf32, #tpu.memory_space<smem>>
    %809 = vector.broadcast %808 : f32 to vector<8x128xf32>
    %810 = arith.mulf %388, %809 : vector<8x128xf32>
    %811 = arith.addf %807, %810 : vector<8x128xf32>
    %c206 = arith.constant 206 : index
    %812 = memref.load %arg1[%c206] : memref<251xf32, #tpu.memory_space<smem>>
    %813 = vector.broadcast %812 : f32 to vector<8x128xf32>
    %814 = arith.mulf %432, %813 : vector<8x128xf32>
    %815 = arith.addf %811, %814 : vector<8x128xf32>
    %c216 = arith.constant 216 : index
    %816 = memref.load %arg1[%c216] : memref<251xf32, #tpu.memory_space<smem>>
    %817 = vector.broadcast %816 : f32 to vector<8x128xf32>
    %818 = arith.mulf %476, %817 : vector<8x128xf32>
    %819 = arith.addf %815, %818 : vector<8x128xf32>
    %c226 = arith.constant 226 : index
    %820 = memref.load %arg1[%c226] : memref<251xf32, #tpu.memory_space<smem>>
    %821 = vector.broadcast %820 : f32 to vector<8x128xf32>
    %822 = arith.mulf %520, %821 : vector<8x128xf32>
    %823 = arith.addf %819, %822 : vector<8x128xf32>
    %c236 = arith.constant 236 : index
    %824 = memref.load %arg1[%c236] : memref<251xf32, #tpu.memory_space<smem>>
    %825 = vector.broadcast %824 : f32 to vector<8x128xf32>
    %826 = arith.addf %823, %825 : vector<8x128xf32>
    %cst_27 = arith.constant 0.000000e+00 : f32
    %827 = vector.broadcast %cst_27 : f32 to vector<8x128xf32>
    %828 = arith.maximumf %826, %827 : vector<8x128xf32>
    %c137 = arith.constant 137 : index
    %829 = memref.load %arg1[%c137] : memref<251xf32, #tpu.memory_space<smem>>
    %830 = vector.broadcast %829 : f32 to vector<8x128xf32>
    %831 = arith.mulf %124, %830 : vector<8x128xf32>
    %c147 = arith.constant 147 : index
    %832 = memref.load %arg1[%c147] : memref<251xf32, #tpu.memory_space<smem>>
    %833 = vector.broadcast %832 : f32 to vector<8x128xf32>
    %834 = arith.mulf %168, %833 : vector<8x128xf32>
    %835 = arith.addf %831, %834 : vector<8x128xf32>
    %c157 = arith.constant 157 : index
    %836 = memref.load %arg1[%c157] : memref<251xf32, #tpu.memory_space<smem>>
    %837 = vector.broadcast %836 : f32 to vector<8x128xf32>
    %838 = arith.mulf %212, %837 : vector<8x128xf32>
    %839 = arith.addf %835, %838 : vector<8x128xf32>
    %c167 = arith.constant 167 : index
    %840 = memref.load %arg1[%c167] : memref<251xf32, #tpu.memory_space<smem>>
    %841 = vector.broadcast %840 : f32 to vector<8x128xf32>
    %842 = arith.mulf %256, %841 : vector<8x128xf32>
    %843 = arith.addf %839, %842 : vector<8x128xf32>
    %c177 = arith.constant 177 : index
    %844 = memref.load %arg1[%c177] : memref<251xf32, #tpu.memory_space<smem>>
    %845 = vector.broadcast %844 : f32 to vector<8x128xf32>
    %846 = arith.mulf %300, %845 : vector<8x128xf32>
    %847 = arith.addf %843, %846 : vector<8x128xf32>
    %c187 = arith.constant 187 : index
    %848 = memref.load %arg1[%c187] : memref<251xf32, #tpu.memory_space<smem>>
    %849 = vector.broadcast %848 : f32 to vector<8x128xf32>
    %850 = arith.mulf %344, %849 : vector<8x128xf32>
    %851 = arith.addf %847, %850 : vector<8x128xf32>
    %c197 = arith.constant 197 : index
    %852 = memref.load %arg1[%c197] : memref<251xf32, #tpu.memory_space<smem>>
    %853 = vector.broadcast %852 : f32 to vector<8x128xf32>
    %854 = arith.mulf %388, %853 : vector<8x128xf32>
    %855 = arith.addf %851, %854 : vector<8x128xf32>
    %c207 = arith.constant 207 : index
    %856 = memref.load %arg1[%c207] : memref<251xf32, #tpu.memory_space<smem>>
    %857 = vector.broadcast %856 : f32 to vector<8x128xf32>
    %858 = arith.mulf %432, %857 : vector<8x128xf32>
    %859 = arith.addf %855, %858 : vector<8x128xf32>
    %c217 = arith.constant 217 : index
    %860 = memref.load %arg1[%c217] : memref<251xf32, #tpu.memory_space<smem>>
    %861 = vector.broadcast %860 : f32 to vector<8x128xf32>
    %862 = arith.mulf %476, %861 : vector<8x128xf32>
    %863 = arith.addf %859, %862 : vector<8x128xf32>
    %c227 = arith.constant 227 : index
    %864 = memref.load %arg1[%c227] : memref<251xf32, #tpu.memory_space<smem>>
    %865 = vector.broadcast %864 : f32 to vector<8x128xf32>
    %866 = arith.mulf %520, %865 : vector<8x128xf32>
    %867 = arith.addf %863, %866 : vector<8x128xf32>
    %c237 = arith.constant 237 : index
    %868 = memref.load %arg1[%c237] : memref<251xf32, #tpu.memory_space<smem>>
    %869 = vector.broadcast %868 : f32 to vector<8x128xf32>
    %870 = arith.addf %867, %869 : vector<8x128xf32>
    %cst_28 = arith.constant 0.000000e+00 : f32
    %871 = vector.broadcast %cst_28 : f32 to vector<8x128xf32>
    %872 = arith.maximumf %870, %871 : vector<8x128xf32>
    %c138 = arith.constant 138 : index
    %873 = memref.load %arg1[%c138] : memref<251xf32, #tpu.memory_space<smem>>
    %874 = vector.broadcast %873 : f32 to vector<8x128xf32>
    %875 = arith.mulf %124, %874 : vector<8x128xf32>
    %c148 = arith.constant 148 : index
    %876 = memref.load %arg1[%c148] : memref<251xf32, #tpu.memory_space<smem>>
    %877 = vector.broadcast %876 : f32 to vector<8x128xf32>
    %878 = arith.mulf %168, %877 : vector<8x128xf32>
    %879 = arith.addf %875, %878 : vector<8x128xf32>
    %c158 = arith.constant 158 : index
    %880 = memref.load %arg1[%c158] : memref<251xf32, #tpu.memory_space<smem>>
    %881 = vector.broadcast %880 : f32 to vector<8x128xf32>
    %882 = arith.mulf %212, %881 : vector<8x128xf32>
    %883 = arith.addf %879, %882 : vector<8x128xf32>
    %c168 = arith.constant 168 : index
    %884 = memref.load %arg1[%c168] : memref<251xf32, #tpu.memory_space<smem>>
    %885 = vector.broadcast %884 : f32 to vector<8x128xf32>
    %886 = arith.mulf %256, %885 : vector<8x128xf32>
    %887 = arith.addf %883, %886 : vector<8x128xf32>
    %c178 = arith.constant 178 : index
    %888 = memref.load %arg1[%c178] : memref<251xf32, #tpu.memory_space<smem>>
    %889 = vector.broadcast %888 : f32 to vector<8x128xf32>
    %890 = arith.mulf %300, %889 : vector<8x128xf32>
    %891 = arith.addf %887, %890 : vector<8x128xf32>
    %c188 = arith.constant 188 : index
    %892 = memref.load %arg1[%c188] : memref<251xf32, #tpu.memory_space<smem>>
    %893 = vector.broadcast %892 : f32 to vector<8x128xf32>
    %894 = arith.mulf %344, %893 : vector<8x128xf32>
    %895 = arith.addf %891, %894 : vector<8x128xf32>
    %c198 = arith.constant 198 : index
    %896 = memref.load %arg1[%c198] : memref<251xf32, #tpu.memory_space<smem>>
    %897 = vector.broadcast %896 : f32 to vector<8x128xf32>
    %898 = arith.mulf %388, %897 : vector<8x128xf32>
    %899 = arith.addf %895, %898 : vector<8x128xf32>
    %c208 = arith.constant 208 : index
    %900 = memref.load %arg1[%c208] : memref<251xf32, #tpu.memory_space<smem>>
    %901 = vector.broadcast %900 : f32 to vector<8x128xf32>
    %902 = arith.mulf %432, %901 : vector<8x128xf32>
    %903 = arith.addf %899, %902 : vector<8x128xf32>
    %c218 = arith.constant 218 : index
    %904 = memref.load %arg1[%c218] : memref<251xf32, #tpu.memory_space<smem>>
    %905 = vector.broadcast %904 : f32 to vector<8x128xf32>
    %906 = arith.mulf %476, %905 : vector<8x128xf32>
    %907 = arith.addf %903, %906 : vector<8x128xf32>
    %c228 = arith.constant 228 : index
    %908 = memref.load %arg1[%c228] : memref<251xf32, #tpu.memory_space<smem>>
    %909 = vector.broadcast %908 : f32 to vector<8x128xf32>
    %910 = arith.mulf %520, %909 : vector<8x128xf32>
    %911 = arith.addf %907, %910 : vector<8x128xf32>
    %c238 = arith.constant 238 : index
    %912 = memref.load %arg1[%c238] : memref<251xf32, #tpu.memory_space<smem>>
    %913 = vector.broadcast %912 : f32 to vector<8x128xf32>
    %914 = arith.addf %911, %913 : vector<8x128xf32>
    %cst_29 = arith.constant 0.000000e+00 : f32
    %915 = vector.broadcast %cst_29 : f32 to vector<8x128xf32>
    %916 = arith.maximumf %914, %915 : vector<8x128xf32>
    %c139 = arith.constant 139 : index
    %917 = memref.load %arg1[%c139] : memref<251xf32, #tpu.memory_space<smem>>
    %918 = vector.broadcast %917 : f32 to vector<8x128xf32>
    %919 = arith.mulf %124, %918 : vector<8x128xf32>
    %c149 = arith.constant 149 : index
    %920 = memref.load %arg1[%c149] : memref<251xf32, #tpu.memory_space<smem>>
    %921 = vector.broadcast %920 : f32 to vector<8x128xf32>
    %922 = arith.mulf %168, %921 : vector<8x128xf32>
    %923 = arith.addf %919, %922 : vector<8x128xf32>
    %c159 = arith.constant 159 : index
    %924 = memref.load %arg1[%c159] : memref<251xf32, #tpu.memory_space<smem>>
    %925 = vector.broadcast %924 : f32 to vector<8x128xf32>
    %926 = arith.mulf %212, %925 : vector<8x128xf32>
    %927 = arith.addf %923, %926 : vector<8x128xf32>
    %c169 = arith.constant 169 : index
    %928 = memref.load %arg1[%c169] : memref<251xf32, #tpu.memory_space<smem>>
    %929 = vector.broadcast %928 : f32 to vector<8x128xf32>
    %930 = arith.mulf %256, %929 : vector<8x128xf32>
    %931 = arith.addf %927, %930 : vector<8x128xf32>
    %c179 = arith.constant 179 : index
    %932 = memref.load %arg1[%c179] : memref<251xf32, #tpu.memory_space<smem>>
    %933 = vector.broadcast %932 : f32 to vector<8x128xf32>
    %934 = arith.mulf %300, %933 : vector<8x128xf32>
    %935 = arith.addf %931, %934 : vector<8x128xf32>
    %c189 = arith.constant 189 : index
    %936 = memref.load %arg1[%c189] : memref<251xf32, #tpu.memory_space<smem>>
    %937 = vector.broadcast %936 : f32 to vector<8x128xf32>
    %938 = arith.mulf %344, %937 : vector<8x128xf32>
    %939 = arith.addf %935, %938 : vector<8x128xf32>
    %c199 = arith.constant 199 : index
    %940 = memref.load %arg1[%c199] : memref<251xf32, #tpu.memory_space<smem>>
    %941 = vector.broadcast %940 : f32 to vector<8x128xf32>
    %942 = arith.mulf %388, %941 : vector<8x128xf32>
    %943 = arith.addf %939, %942 : vector<8x128xf32>
    %c209 = arith.constant 209 : index
    %944 = memref.load %arg1[%c209] : memref<251xf32, #tpu.memory_space<smem>>
    %945 = vector.broadcast %944 : f32 to vector<8x128xf32>
    %946 = arith.mulf %432, %945 : vector<8x128xf32>
    %947 = arith.addf %943, %946 : vector<8x128xf32>
    %c219 = arith.constant 219 : index
    %948 = memref.load %arg1[%c219] : memref<251xf32, #tpu.memory_space<smem>>
    %949 = vector.broadcast %948 : f32 to vector<8x128xf32>
    %950 = arith.mulf %476, %949 : vector<8x128xf32>
    %951 = arith.addf %947, %950 : vector<8x128xf32>
    %c229 = arith.constant 229 : index
    %952 = memref.load %arg1[%c229] : memref<251xf32, #tpu.memory_space<smem>>
    %953 = vector.broadcast %952 : f32 to vector<8x128xf32>
    %954 = arith.mulf %520, %953 : vector<8x128xf32>
    %955 = arith.addf %951, %954 : vector<8x128xf32>
    %c239 = arith.constant 239 : index
    %956 = memref.load %arg1[%c239] : memref<251xf32, #tpu.memory_space<smem>>
    %957 = vector.broadcast %956 : f32 to vector<8x128xf32>
    %958 = arith.addf %955, %957 : vector<8x128xf32>
    %cst_30 = arith.constant 0.000000e+00 : f32
    %959 = vector.broadcast %cst_30 : f32 to vector<8x128xf32>
    %960 = arith.maximumf %958, %959 : vector<8x128xf32>
    %c240 = arith.constant 240 : index
    %961 = memref.load %arg1[%c240] : memref<251xf32, #tpu.memory_space<smem>>
    %962 = vector.broadcast %961 : f32 to vector<8x128xf32>
    %963 = arith.mulf %564, %962 : vector<8x128xf32>
    %c241 = arith.constant 241 : index
    %964 = memref.load %arg1[%c241] : memref<251xf32, #tpu.memory_space<smem>>
    %965 = vector.broadcast %964 : f32 to vector<8x128xf32>
    %966 = arith.mulf %608, %965 : vector<8x128xf32>
    %967 = arith.addf %963, %966 : vector<8x128xf32>
    %c242 = arith.constant 242 : index
    %968 = memref.load %arg1[%c242] : memref<251xf32, #tpu.memory_space<smem>>
    %969 = vector.broadcast %968 : f32 to vector<8x128xf32>
    %970 = arith.mulf %652, %969 : vector<8x128xf32>
    %971 = arith.addf %967, %970 : vector<8x128xf32>
    %c243 = arith.constant 243 : index
    %972 = memref.load %arg1[%c243] : memref<251xf32, #tpu.memory_space<smem>>
    %973 = vector.broadcast %972 : f32 to vector<8x128xf32>
    %974 = arith.mulf %696, %973 : vector<8x128xf32>
    %975 = arith.addf %971, %974 : vector<8x128xf32>
    %c244 = arith.constant 244 : index
    %976 = memref.load %arg1[%c244] : memref<251xf32, #tpu.memory_space<smem>>
    %977 = vector.broadcast %976 : f32 to vector<8x128xf32>
    %978 = arith.mulf %740, %977 : vector<8x128xf32>
    %979 = arith.addf %975, %978 : vector<8x128xf32>
    %c245 = arith.constant 245 : index
    %980 = memref.load %arg1[%c245] : memref<251xf32, #tpu.memory_space<smem>>
    %981 = vector.broadcast %980 : f32 to vector<8x128xf32>
    %982 = arith.mulf %784, %981 : vector<8x128xf32>
    %983 = arith.addf %979, %982 : vector<8x128xf32>
    %c246 = arith.constant 246 : index
    %984 = memref.load %arg1[%c246] : memref<251xf32, #tpu.memory_space<smem>>
    %985 = vector.broadcast %984 : f32 to vector<8x128xf32>
    %986 = arith.mulf %828, %985 : vector<8x128xf32>
    %987 = arith.addf %983, %986 : vector<8x128xf32>
    %c247 = arith.constant 247 : index
    %988 = memref.load %arg1[%c247] : memref<251xf32, #tpu.memory_space<smem>>
    %989 = vector.broadcast %988 : f32 to vector<8x128xf32>
    %990 = arith.mulf %872, %989 : vector<8x128xf32>
    %991 = arith.addf %987, %990 : vector<8x128xf32>
    %c248 = arith.constant 248 : index
    %992 = memref.load %arg1[%c248] : memref<251xf32, #tpu.memory_space<smem>>
    %993 = vector.broadcast %992 : f32 to vector<8x128xf32>
    %994 = arith.mulf %916, %993 : vector<8x128xf32>
    %995 = arith.addf %991, %994 : vector<8x128xf32>
    %c249 = arith.constant 249 : index
    %996 = memref.load %arg1[%c249] : memref<251xf32, #tpu.memory_space<smem>>
    %997 = vector.broadcast %996 : f32 to vector<8x128xf32>
    %998 = arith.mulf %960, %997 : vector<8x128xf32>
    %999 = arith.addf %995, %998 : vector<8x128xf32>
    %c250 = arith.constant 250 : index
    %1000 = memref.load %arg1[%c250] : memref<251xf32, #tpu.memory_space<smem>>
    %1001 = vector.broadcast %1000 : f32 to vector<8x128xf32>
    %1002 = arith.addf %999, %1001 : vector<8x128xf32>
    %c0_31 = arith.constant 0 : index
    %c0_32 = arith.constant 0 : index
    %1003 = vector.load %arg3[%c0_31, %c0_32] : memref<8x128xf32, #tpu.memory_space<vmem>>, vector<8x128xf32>
    tpu.vector_store %arg3[%c0_31, %c0_32], %1002 {strides = array<i32>} : memref<8x128xf32, #tpu.memory_space<vmem>>, vector<8x128xf32>,
    return
  }
  func.func @transform_0(%arg0: i32, %arg1: memref<251xf32, #tpu.memory_space<smem>>) -> (i32, i32) {
    %c0_i32 = arith.constant 0 : i32
    %c0_i32_0 = arith.constant 0 : i32
    return %arg0, %c0_i32 : i32, i32
  }
  func.func @transform_1(%arg0: i32, %arg1: memref<251xf32, #tpu.memory_space<smem>>) -> (i32, i32) {
    %c0_i32 = arith.constant 0 : i32
    %c0_i32_0 = arith.constant 0 : i32
    return %arg0, %c0_i32 : i32, i32
  }
}

</mosaic_0001>

<bundles_post_ra>
// kernel: tpu_custom_call.1
= control target key start
LH: loop header
LB: loop body
LE: loop exit
PB: predicated region body
PF: predicated region fallthrough
CT: control target
= control target key end

     0   :  { %s1322_s9 = smov [#allocation3]   ;;  %s2377_s0 = inlined_call_operand.hbm [shape: f32[251], index: 0, kind: input, shape index: {}]   ;;  %s2378_s1 = inlined_call_operand.hbm [shape: f32[8,128], index: 1, kind: input, shape index: {}]   ;;  %s2379_s2 = inlined_call_operand.hbm [shape: f32[8,128], index: 2, kind: output, shape index: {}]  }
   0x1   :  { %2381 = sst [smem:[#allocation50_spill]] %s2379_s2 }
   0x2   :  { %8 = dma.hbm_to_smem %s2377_s0, 32, %s1322_s9, [#allocation2] }
   0x3   :  { %1316 = dma.done.wait [#allocation2], 32 }
   0x4   :  { %1317 = vsyncadd [#allocation2], 4294967264 }
   0x5   :  { %10 = sfence }
   0x6   :  { %11 = vsyncpa [#allocation5], 0 }
   0x7   :  { %12 = vsyncpa [#allocation6], 0  ;;  %s1323_s12 = smov [#allocation4]  }
   0x8   :  { %s19_s13 = sshll.u32 %s1323_s12, 4  ;;  %s20_s13 = int_to_ptr.vmem [resolvable:$true] %s19_s13 }
   0x9   :  { %s1284_s14 = scalar_lea.vmem %s20_s13, 128  ;;  %p1289_p1 = scmp.lt.s32.totalorder %s20_s13, %s20_s13 }
   0xa   :  { %p1285_p0 = scmp.ne.s32.totalorder %s20_s13, %s1284_s14  ;;  %p1290_p2 = scmp.lt.s32.totalorder %s1284_s14, %s1284_s14 }
   0xc   :  { %p1291_p3 = por %p1290_p2, %p1289_p1 }
   0xe   :  { %p1292_p4 = pnand %p1291_p3, %p1285_p0 }
  0x10   :  { %1295 = shalt.err (!%p1292_p4)
}
  0x11   :  { %22 = dma.hbm_to_vmem [thread:$0]  %s2378_s1, 128, %s20_s13, [#allocation5]  }
  0x12   :  { %1318 = dma.done.wait [#allocation5], 128  }
  0x13   :  { %1319 = vsyncadd [#allocation5], 4294967168  ;;  %s1346_s0 = sld [smem:[#allocation3]]  ;;  %v1474_v0 = vld [vmem:[#allocation4] sm:$0xff] }
  0x14   :  { %s1348_s17 = sld [smem:[#allocation3 + $0xa]] }
  0x15   :  { %s1350_s18 = sld [smem:[#allocation3 + $0x1]] }
  0x16   :  { %s1352_s19 = sld [smem:[#allocation3 + $0xb]] }
  0x17   :  { %s1354_s20 = sld [smem:[#allocation3 + $0x2]] }
  0x18   :  { %s1356_s21 = sld [smem:[#allocation3 + $0xc]] }
  0x19   :  { %s1358_s22 = sld [smem:[#allocation3 + $0x3]]  ;;  %v28_v1 = vstv %s1346_s0 }
  0x1a   :  { %s1360_s23 = sld [smem:[#allocation3 + $0xd]]  ;;  %v29_v4 = vmul.f32 %v28_v1, %v1474_v0  ;;  %v31_v6 = vstv %s1348_s17 }
  0x1b   :  { %s1362_s24 = sld [smem:[#allocation3 + $0x4]]  ;;  %v35_v2 = vstv %s1350_s18 }
  0x1c   :  { %s1364_s1 = sld [smem:[#allocation3 + $0xe]]  ;;  %v36_v5 = vmul.f32 %v35_v2, %v1474_v0  ;;  %v38_v7 = vstv %s1352_s19  ;;  %v32_v10 = vadd.f32 %v31_v6, %v29_v4 }
  0x1d   :  { %s1366_s25 = sld [smem:[#allocation3 + $0x5]]  ;;  %v42_v3 = vstv %s1354_s20 }
  0x1e   :  { %s1368_s26 = sld [smem:[#allocation3 + $0xf]]  ;;  %v43_v8 = vmul.f32 %v42_v3, %v1474_v0  ;;  %v45_v9 = vstv %s1356_s21  ;;  %v39_v11 = vadd.f32 %v38_v7, %v36_v5  ;;  %v1511_v17 = vmax.f32 %v32_v10, 0.0 }
  0x1f   :  { %s1370_s27 = sld [smem:[#allocation3 + $0x6]]  ;;  %v49_v12 = vstv %s1358_s22 }
  0x20   :  { %s1372_s28 = sld [smem:[#allocation3 + $0x10]]  ;;  %v46_v13 = vadd.f32 %v45_v9, %v43_v8  ;;  %v50_v14 = vmul.f32 %v49_v12, %v1474_v0  ;;  %v1513_v18 = vmax.f32 %v39_v11, 0.0  ;;  %v52_v19 = vstv %s1360_s23 }
  0x21   :  { %s1374_s29 = sld [smem:[#allocation3 + $0x7]]  ;;  %v56_v15 = vstv %s1362_s24 }
  0x22   :  { %s1376_s30 = sld [smem:[#allocation3 + $0x11]]  ;;  %v1518_v20 = vmax.f32 %v46_v13, 0.0  ;;  %v57_v23 = vmul.f32 %v56_v15, %v1474_v0  ;;  %v53_v27 = vadd.f32 %v52_v19, %v50_v14  ;;  %v59_v28 = vstv %s1364_s1 }
  0x23   :  { %s1378_s3 = sld [smem:[#allocation3 + $0x8]]  ;;  %v63_v16 = vstv %s1366_s25 }
  0x24   :  { %s1380_s4 = sld [smem:[#allocation3 + $0x12]]  ;;  %v64_v24 = vmul.f32 %v63_v16, %v1474_v0  ;;  %v66_v29 = vstv %s1368_s26  ;;  %v60_v38 = vadd.f32 %v59_v28, %v57_v23  ;;  %v1555_v45 = vmax.f32 %v53_v27, 0.0 }
  0x25   :  { %s1382_s5 = sld [smem:[#allocation3 + $0x9]]  ;;  %v70_v30 = vstv %s1370_s27 }
  0x26   :  { %2382 = sst [smem:[#allocation11_spill]] %s1372_s28  ;;  %v67_v39 = vadd.f32 %v66_v29, %v64_v24  ;;  %v71_v40 = vmul.f32 %v70_v30, %v1474_v0  ;;  %v1566_v53 = vmax.f32 %v60_v38, 0.0 }
  0x27   :  { %2383 = sst [smem:[#allocation12_spill]] %s1374_s29 }
  0x28   :  { %2384 = sst [smem:[#allocation13_spill]] %s1376_s30  ;;  %v1568_v54 = vmax.f32 %v67_v39, 0.0 }
  0x29   :  { %2385 = sst [smem:[#allocation14_spill]] %s1378_s3 }
  0x2a   :  { %2386 = sst [smem:[#allocation15_spill]] %s1380_s4 }
  0x2b   :  { %2387 = sst [smem:[#allocation16_spill]] %s1382_s5 }
  0x2c   :  { %s1384_s6 = sld [smem:[#allocation3 + $0x13]] }
  0x2d   :  { %s1386_s7 = sld [smem:[#allocation3 + $0x14]] }
  0x2e   :  { %s1388_s8 = sld [smem:[#allocation3 + $0x1e]] }
  0x2f   :  { %s1390_s9 = sld [smem:[#allocation3 + $0x28]] }
  0x30   :  { %s1392_s10 = sld [smem:[#allocation3 + $0x32]] }
  0x31   :  { %s1394_s11 = sld [smem:[#allocation3 + $0x3c]] }
  0x32   :  { %2388 = sst [smem:[#allocation17_spill]] %s1384_s6 }
  0x33   :  { %s1396_s12 = sld [smem:[#allocation3 + $0x46]]  ;;  %v98_v21 = vstv %s1386_s7 }
  0x34   :  { %s1398_s13 = sld [smem:[#allocation3 + $0x50]]  ;;  %v101_v22 = vstv %s1388_s8  ;;  %v99_v31 = vmul.f32 %v98_v21, %v1511_v17 }
  0x35   :  { %s1400_s14 = sld [smem:[#allocation3 + $0x5a]]  ;;  %v102_v32 = vmul.f32 %v101_v22, %v1513_v18  ;;  %v105_v35 = vstv %s1390_s9 }
  0x36   :  { %2389 = sst [smem:[#allocation18_spill]] %s1392_s10  ;;  %v106_v47 = vmul.f32 %v105_v35, %v1518_v20 }
  0x37   :  { %2390 = sst [smem:[#allocation19_spill]] %s1394_s11  ;;  %v103_v46 = vadd.f32 %v102_v32, %v99_v31 }
  0x38   :  { %s1402_s15 = sld [smem:[#allocation3 + $0x64]] }
  0x39   :  { %2391 = sst [smem:[#allocation20_spill]] %s1396_s12  ;;  %v107_v62 = vadd.f32 %v106_v47, %v103_v46 }
  0x3a   :  { %2392 = sst [smem:[#allocation21_spill]] %s1398_s13 }
  0x3b   :  { %2393 = sst [smem:[#allocation22_spill]] %s1400_s14 }
  0x3c   :  { %s1404_s16 = sld [smem:[#allocation3 + $0x6e]] }
  0x3d   :  { %s1406_s2 = sld [smem:[#allocation3 + $0x78]] }
  0x3e   :  { %2394 = sst [smem:[#allocation23_spill]] %s1402_s15 }
  0x3f   :  { %s1408_s6 = sld [smem:[#allocation3 + $0x15]] }
  0x40   :  { %s1410_s4 = sld [smem:[#allocation3 + $0x1f]] }
  0x41   :  { %s1412_s5 = sld [smem:[#allocation3 + $0x29]] }
  0x42   :  { %2395 = sst [smem:[#allocation24_spill]] %s1404_s16 }
  0x43   :  { %2396 = sst [smem:[#allocation25_spill]] %s1406_s2 }
  0x44   :  { %s1414_s3 = sld [smem:[#allocation3 + $0x33]] }
  0x45   :  { %s1416_s11 = sld [smem:[#allocation3 + $0x3d]]  ;;  %v141_v25 = vstv %s1408_s6 }
  0x46   :  { %s1418_s12 = sld [smem:[#allocation3 + $0x47]]  ;;  %v144_v26 = vstv %s1410_s4  ;;  %v142_v36 = vmul.f32 %v141_v25, %v1511_v17 }
  0x47   :  { %s1420_s13 = sld [smem:[#allocation3 + $0x51]]  ;;  %v145_v37 = vmul.f32 %v144_v26, %v1513_v18  ;;  %v148_v41 = vstv %s1412_s5 }
  0x48   :  { %s1422_s14 = sld [smem:[#allocation3 + $0x5b]]  ;;  %v149_v52 = vmul.f32 %v148_v41, %v1518_v20 }
  0x49   :  { %s1424_s15 = sld [smem:[#allocation3 + $0x65]]  ;;  %v146_v51 = vadd.f32 %v145_v37, %v142_v36 }
  0x4a   :  { %2397 = sst [smem:[#allocation26_spill]] %s1414_s3 }
  0x4b   :  { %2398 = sst [smem:[#allocation27_spill]] %s1416_s11  ;;  %v150_v4 = vadd.f32 %v149_v52, %v146_v51 }
  0x4c   :  { %2399 = sst [smem:[#allocation28_spill]] %s1418_s12 }
  0x4d   :  { %2400 = sst [smem:[#allocation29_spill]] %s1420_s13 }
  0x4e   :  { %2401 = sst [smem:[#allocation30_spill]] %s1422_s14 }
  0x4f   :  { %2402 = sst [smem:[#allocation31_spill]] %s1424_s15 }
  0x50   :  { %s1426_s16 = sld [smem:[#allocation3 + $0x6f]] }
  0x51   :  { %s1428_s2 = sld [smem:[#allocation3 + $0x79]] }
  0x52   :  { %s1430_s30 = sld [smem:[#allocation3 + $0x16]] }
  0x53   :  { %s1432_s10 = sld [smem:[#allocation3 + $0x20]] }
  0x54   :  { %s1434_s29 = sld [smem:[#allocation3 + $0x2a]] }
  0x55   :  { %s1436_s3 = sld [smem:[#allocation3 + $0x34]] }
  0x56   :  { %2403 = sst [smem:[#allocation32_spill]] %s1426_s16 }
  0x57   :  { %2404 = sst [smem:[#allocation33_spill]] %s1428_s2 }
  0x58   :  { %s1438_s11 = sld [smem:[#allocation3 + $0x3e]]  ;;  %v184_v33 = vstv %s1430_s30 }
  0x59   :  { %s1440_s12 = sld [smem:[#allocation3 + $0x48]]  ;;  %v187_v34 = vstv %s1432_s10  ;;  %v185_v43 = vmul.f32 %v184_v33, %v1511_v17 }
  0x5a   :  { %2405 = sst [smem:[#allocation34_spill]] %s1434_s29  ;;  %v188_v44 = vmul.f32 %v187_v34, %v1513_v18 }
  0x5b   :  { %2406 = sst [smem:[#allocation35_spill]] %s1436_s3 }
  0x5c   :  { %s1442_s13 = sld [smem:[#allocation3 + $0x52]]  ;;  %v189_v57 = vadd.f32 %v188_v44, %v185_v43 }
  0x5d   :  { %s1444_s14 = sld [smem:[#allocation3 + $0x5c]] }
  0x5e   :  { %2407 = sst [smem:[#allocation36_spill]] %s1438_s11 }
  0x5f   :  { %2408 = sst [smem:[#allocation37_spill]] %s1440_s12 }
  0x60   :  { %s1446_s16 = sld [smem:[#allocation3 + $0x66]] }
  0x61   :  { %s1448_s2 = sld [smem:[#allocation3 + $0x70]] }
  0x62   :  { %2409 = sst [smem:[#allocation38_spill]] %s1442_s13 }
  0x63   :  { %2410 = sst [smem:[#allocation39_spill]] %s1444_s14 }
  0x64   :  { %s1450_s15 = sld [smem:[#allocation3 + $0x7a]] }
  0x65   :  { %s1452_s29 = sld [smem:[#allocation3 + $0x17]] }
  0x66   :  { %2411 = sst [smem:[#allocation40_spill]] %s1446_s16 }
  0x67   :  { %2412 = sst [smem:[#allocation41_spill]] %s1448_s2 }
  0x68   :  { %s1454_s3 = sld [smem:[#allocation3 + $0x21]] }
  0x69   :  { %s1456_s11 = sld [smem:[#allocation3 + $0x2b]] }
  0x6a   :  { %2413 = sst [smem:[#allocation42_spill]] %s1450_s15 }
  0x6b   :  { %s1458_s12 = sld [smem:[#allocation3 + $0x35]]  ;;  %v227_v59 = vstv %s1452_s29 }
  0x6c   :  { %s1460_s13 = sld [smem:[#allocation3 + $0x3f]]  ;;  %v228_v8 = vmul.f32 %v227_v59, %v1511_v17 }
  0x6d   :  { %s1462_s14 = sld [smem:[#allocation3 + $0x49]] }
  0x6e   :  { %2414 = sst [smem:[#allocation43_spill]] %s1454_s3 }
  0x6f   :  { %s1464_s16 = sld [smem:[#allocation3 + $0x53]]  ;;  %v234_v13 = vstv %s1456_s11 }
  0x70   :  { %s1466_s2 = sld [smem:[#allocation3 + $0x5d]]  ;;  %v235_v28 = vmul.f32 %v234_v13, %v1518_v20 }
  0x71   :  { %s1468_s15 = sld [smem:[#allocation3 + $0x67]]  ;;  %v238_v32 = vstv %s1458_s12 }
  0x72   :  { %2415 = sst [smem:[#allocation44_spill]] %s1460_s13 }
  0x73   :  { %2416 = sst [smem:[#allocation45_spill]] %s1462_s14 }
  0x74   :  { %s1470_s28 = sld [smem:[#allocation3 + $0x71]] }
  0x75   :  { %2417 = sst [smem:[#allocation46_spill]] %s1464_s16 }
  0x76   :  { %s1472_s3 = sld [smem:[#allocation3 + $0x7b]] }
  0x77   :  { %s1478_s13 = sld [smem:[#allocation3 + $0x18]] }
  0x78   :  { %s1481_s14 = sld [smem:[#allocation3 + $0x22]] }
  0x79   :  { %s1483_s16 = sld [smem:[#allocation3 + $0x2c]] }
  0x7a   :  { %2418 = sst [smem:[#allocation47_spill]] %s1470_s28 }
  0x7b   :  { %s1487_s28 = sld [smem:[#allocation3 + $0x36]] }
  0x7c   :  { %2419 = sst [smem:[#allocation48_spill]] %s1472_s3 }
  0x7d   :  { %s1492_s0 = sld [smem:[#allocation3 + $0x40]] }
  0x7e   :  { %s1495_s18 = sld [smem:[#allocation3 + $0x4a]] }
  0x7f   :  { %s1497_s20 = sld [smem:[#allocation3 + $0x54]] }
  0x80   :  { %s1500_s3 = sld [smem:[#allocation3 + $0x5e]] }
  0x81   :  { %s1502_s17 = sld [smem:[#allocation3 + $0x68]] }
  0x82   :  { %s1504_s19 = sld [smem:[#allocation3 + $0x72]] }
  0x83   :  { %s1509_s21 = sld [smem:[#allocation3 + $0x7c]] }
  0x84   :  { %s1516_s22 = sld [smem:[#allocation3 + $0x19]] }
  0x85   :  { %s1522_s24 = sld [smem:[#allocation3 + $0x23]] }
  0x86   :  { %s1528_s25 = sld [smem:[#allocation3 + $0x2d]] }
  0x87   :  { %s2421_s23 = sld [smem:[#allocation11_spill]] }
  0x88   :  { %s1533_s7 = sld [smem:[#allocation3 + $0x37]] }
  0x89   :  { %2420 = sst [smem:[#allocation49_spill]] %s1509_s21 }
  0x8a   :  { %s1539_s8 = sld [smem:[#allocation3 + $0x41]] }
  0x8b   :  { %s2423_s4 = sld [smem:[#allocation34_spill]] }
  0x8c   :  { %s2424_s1 = sld [smem:[#allocation12_spill]] }
  0x8d   :  { %s1544_s26 = sld [smem:[#allocation3 + $0x4b]]  ;;  %v73_v42 = vstv %s2421_s23 }
  0x8e   :  { %s2426_s27 = sld [smem:[#allocation18_spill]]  ;;  %v74_v55 = vadd.f32 %v73_v42, %v71_v40 }
  0x8f   :  { %s1548_s6 = sld [smem:[#allocation3 + $0x55]] }
  0x90   :  { %2422 = sst [smem:[#allocation11_spill]] %s1539_s8  ;;  %v1594_v10 = vmax.f32 %v74_v55, 0.0 }
  0x91   :  { %s2428_s30 = sld [smem:[#allocation26_spill]]  ;;  %v191_v48 = vstv %s2423_s4 }
  0x92   :  { %s1553_s9 = sld [smem:[#allocation3 + $0x5f]]  ;;  %v77_v49 = vstv %s2424_s1  ;;  %v192_v58 = vmul.f32 %v191_v48, %v1518_v20 }
  0x93   :  { %2425 = sst [smem:[#allocation34_spill]] %s1544_s26  ;;  %v78_v61 = vmul.f32 %v77_v49, %v1474_v0 }
  0x94   :  { %s2430_s10 = sld [smem:[#allocation43_spill]]  ;;  %v109_v50 = vstv %s2426_s27  ;;  %v193_v11 = vadd.f32 %v192_v58, %v189_v57 }
  0x95   :  { %2427 = sst [smem:[#allocation12_spill]] %s1548_s6  ;;  %v110_v63 = vmul.f32 %v109_v50, %v1555_v45 }
  0x96   :  { %s1559_s26 = sld [smem:[#allocation3 + $0x69]] }
  0x97   :  { %s2432_s5 = sld [smem:[#allocation35_spill]]  ;;  %v152_v56 = vstv %s2428_s30  ;;  %v111_v15 = vadd.f32 %v110_v63, %v107_v62 }
  0x98   :  { %2429 = sst [smem:[#allocation18_spill]] %s1553_s9  ;;  %v153_v5 = vmul.f32 %v152_v56, %v1555_v45 }
  0x99   :  { %s1564_s23 = sld [smem:[#allocation3 + $0x73]] }
  0x9a   :  { %s2434_s6 = sld [smem:[#allocation13_spill]]  ;;  %v230_v60 = vstv %s2430_s10  ;;  %v154_v23 = vadd.f32 %v153_v5, %v150_v4 }
  0x9b   :  { %s2435_s9 = sld [smem:[#allocation19_spill]]  ;;  %v231_v9 = vmul.f32 %v230_v60, %v1513_v18 }
  0x9c   :  { %2431 = sst [smem:[#allocation26_spill]] %s1559_s26 }
  0x9d   :  { %s1571_s21 = sld [smem:[#allocation3 + $0x7d]]  ;;  %v195_v1 = vstv %s2432_s5  ;;  %v232_v27 = vadd.f32 %v231_v9, %v228_v8  ;;  %v270_v9 = vstv %s1478_s13 }
  0x9e   :  { %s2437_s4 = sld [smem:[#allocation14_spill]]  ;;  %v196_v12 = vmul.f32 %v195_v1, %v1555_v45 }
  0x9f   :  { %2433 = sst [smem:[#allocation43_spill]] %s1564_s23  ;;  %v236_v43 = vadd.f32 %v235_v28, %v232_v27 }
  0xa0   :  { %s2438_s1 = sld [smem:[#allocation27_spill]]  ;;  %v80_v2 = vstv %s2434_s6  ;;  %v197_v30 = vadd.f32 %v196_v12, %v193_v11  ;;  %v273_v11 = vstv %s1481_s14 }
  0xa1   :  { %s1576_s27 = sld [smem:[#allocation3 + $0x1a]]  ;;  %v113_v3 = vstv %s2435_s9  ;;  %v81_v14 = vadd.f32 %v80_v2, %v78_v61 }
  0xa2   :  { %s1581_s23 = sld [smem:[#allocation3 + $0x24]]  ;;  %v114_v16 = vmul.f32 %v113_v3, %v1566_v53 }
  0xa3   :  { %2436 = sst [smem:[#allocation35_spill]] %s1571_s21  ;;  %v1633_v44 = vmax.f32 %v81_v14, 0.0 }
  0xa4   :  { %s2439_s30 = sld [smem:[#allocation36_spill]]  ;;  %v84_v6 = vstv %s2437_s4  ;;  %v115_v34 = vadd.f32 %v114_v16, %v111_v15 }
  0xa5   :  { %s1586_s21 = sld [smem:[#allocation3 + $0x2e]]  ;;  %v85_v25 = vmul.f32 %v84_v6, %v1474_v0 }
  0xa6   :  { %s2440_s29 = sld [smem:[#allocation16_spill]]  ;;  %v156_v7 = vstv %s2438_s1 }
  0xa7   :  { %s2441_s10 = sld [smem:[#allocation20_spill]]  ;;  %v157_v24 = vmul.f32 %v156_v7, %v1566_v53 }
  0xa8   :  { %s1592_s26 = sld [smem:[#allocation3 + $0x38]] }
  0xa9   :  { %s2443_s6 = sld [smem:[#allocation28_spill]]  ;;  %v158_v39 = vadd.f32 %v157_v24, %v154_v23 }
  0xaa   :  { %s1598_s9 = sld [smem:[#allocation3 + $0x42]]  ;;  %v199_v19 = vstv %s2439_s30 }
  0xab   :  { %s2445_s5 = sld [smem:[#allocation15_spill]]  ;;  %v200_v31 = vmul.f32 %v199_v19, %v1566_v53 }
  0xac   :  { %s1602_s4 = sld [smem:[#allocation3 + $0x4c]]  ;;  %v91_v21 = vstv %s2440_s29 }
  0xad   :  { %v117_v22 = vstv %s2441_s10  ;;  %s2447_s1 = sld [smem:[#allocation37_spill]]  ;;  %v92_v33 = vmul.f32 %v91_v21, %v1474_v0  ;;  %v239_v0 = vmul.f32 %v238_v32, %v1555_v45  ;;  %v201_v46 = vadd.f32 %v200_v31, %v197_v30 }
  0xae   :  { %2442 = sst [smem:[#allocation13_spill]] %s1592_s26  ;;  %v118_v35 = vmul.f32 %v117_v22, %v1568_v54 }
  0xaf   :  { %s1607_s26 = sld [smem:[#allocation3 + $0x56]]  ;;  %v160_v26 = vstv %s2443_s6  ;;  %v240_v60 = vadd.f32 %v239_v0, %v236_v43  ;;  %v281_v43 = vstv %s1487_s28 }
  0xb0   :  { %2444 = sst [smem:[#allocation19_spill]] %s1598_s9  ;;  %v161_v40 = vmul.f32 %v160_v26, %v1568_v54  ;;  %v119_v50 = vadd.f32 %v118_v35, %v115_v34  ;;  %v274_v26 = vmul.f32 %v273_v11, %v1513_v18 }
  0xb1   :  { %s2449_s11 = sld [smem:[#allocation17_spill]]  ;;  %v87_v29 = vstv %s2445_s5 }
  0xb2   :  { %2446 = sst [smem:[#allocation14_spill]] %s1602_s4  ;;  %v88_v41 = vadd.f32 %v87_v29, %v85_v25  ;;  %v162_v56 = vadd.f32 %v161_v40, %v158_v39  ;;  %v271_v25 = vmul.f32 %v270_v9, %v1511_v17  ;;  %v277_v29 = vstv %s1483_s16 }
  0xb3   :  { %s2450_s9 = sld [smem:[#allocation21_spill]]  ;;  %v203_v36 = vstv %s2447_s1  ;;  %v278_v40 = vmul.f32 %v277_v29, %v1518_v20  ;;  %v289_v9 = vstv %s1495_s18 }
  0xb4   :  { %s1612_s8 = sld [smem:[#allocation3 + $0x60]]  ;;  %v204_v47 = vmul.f32 %v203_v36, %v1568_v54  ;;  %v1647_v58 = vmax.f32 %v88_v41, 0.0  ;;  %v254_v36 = vstv %s1466_s2  ;;  %v275_v39 = vadd.f32 %v274_v26, %v271_v25 }
  0xb5   :  { %2448 = sst [smem:[#allocation27_spill]] %s1607_s26  ;;  %v293_v25 = vstv %s1497_s20 }
  0xb6   :  { %s2452_s30 = sld [smem:[#allocation29_spill]]  ;;  %v205_v63 = vadd.f32 %v204_v47, %v201_v46  ;;  %v255_v46 = vmul.f32 %v254_v36, %v1633_v44  ;;  %v294_v36 = vmul.f32 %v293_v25, %v1594_v10 }
  0xb7   :  { %s1617_s29 = sld [smem:[#allocation3 + $0x6a]]  ;;  %v94_v37 = vstv %s2449_s11 }
  0xb8   :  { %s2454_s10 = sld [smem:[#allocation44_spill]]  ;;  %v95_v49 = vadd.f32 %v94_v37, %v92_v33 }
  0xb9   :  { %s1622_s6 = sld [smem:[#allocation3 + $0x74]]  ;;  %v121_v38 = vstv %s2450_s9 }
  0xba   :  { %2451 = sst [smem:[#allocation36_spill]] %s1612_s8  ;;  %v122_v51 = vmul.f32 %v121_v38, %v1594_v10  ;;  %v1658_v3 = vmax.f32 %v95_v49, 0.0  ;;  %v258_v49 = vstv %s1468_s15 }
  0xbb   :  { %s2456_s5 = sld [smem:[#allocation38_spill]] }
  0xbc   :  { %s1627_s8 = sld [smem:[#allocation3 + $0x7e]]  ;;  %v164_v42 = vstv %s2452_s30  ;;  %v123_v4 = vadd.f32 %v122_v51, %v119_v50  ;;  %v279_v51 = vadd.f32 %v278_v40, %v275_v39  ;;  %v301_v39 = vstv %s1502_s17 }
  0xbd   :  { %2453 = sst [smem:[#allocation16_spill]] %s1617_s29  ;;  %v165_v57 = vmul.f32 %v164_v42, %v1594_v10 }
  0xbe   :  { %s2458_s12 = sld [smem:[#allocation22_spill]]  ;;  %v242_v48 = vstv %s2454_s10 }
  0xbf   :  { %2455 = sst [smem:[#allocation20_spill]] %s1622_s6  ;;  %v243_v61 = vmul.f32 %v242_v48, %v1566_v53  ;;  %v166_v7 = vadd.f32 %v165_v57, %v162_v56 }
  0xc0   :  { %s1631_s29 = sld [smem:[#allocation3 + $0x1b]] }
  0xc1   :  { %s2459_s26 = sld [smem:[#allocation30_spill]]  ;;  %v207_v52 = vstv %s2456_s5  ;;  %v244_v14 = vadd.f32 %v243_v61, %v240_v60  ;;  %v259_v61 = vmul.f32 %v258_v49, %v1647_v58 }
  0xc2   :  { %2457 = sst [smem:[#allocation28_spill]] %s1627_s8  ;;  %v208_v1 = vmul.f32 %v207_v52, %v1594_v10  ;;  %v282_v52 = vmul.f32 %v281_v43, %v1555_v45  ;;  %v305_v43 = vstv %s1504_s19 }
  0xc3   :  { %s2460_s9 = sld [smem:[#allocation23_spill]] }
  0xc4   :  { %s1637_s1 = sld [smem:[#allocation3 + $0x25]]  ;;  %v125_v55 = vstv %s2458_s12  ;;  %v209_v19 = vadd.f32 %v208_v1, %v205_v63  ;;  %v316_v63 = vstv %s1522_s24 }
  0xc5   :  { %s2461_s11 = sld [smem:[#allocation45_spill]]  ;;  %v126_v5 = vmul.f32 %v125_v55, %v1633_v44 }
  0xc6   :  { %s1641_s30 = sld [smem:[#allocation3 + $0x2f]]  ;;  %v399_v40 = vstv %s1631_s29 }
  0xc7   :  { %s2462_s8 = sld [smem:[#allocation39_spill]]  ;;  %v168_v59 = vstv %s2459_s26  ;;  %v127_v23 = vadd.f32 %v126_v5, %v123_v4 }
  0xc8   :  { %s1645_s6 = sld [smem:[#allocation3 + $0x39]]  ;;  %v169_v8 = vmul.f32 %v168_v59, %v1633_v44  ;;  %v285_v59 = vstv %s1492_s0 }
  0xc9   :  { %s1651_s10 = sld [smem:[#allocation3 + $0x43]]  ;;  %v129_v62 = vstv %s2460_s9 }
  0xca   :  { %s2465_s5 = sld [smem:[#allocation31_spill]]  ;;  %v130_v12 = vmul.f32 %v129_v62, %v1647_v58  ;;  %v170_v27 = vadd.f32 %v169_v8, %v166_v7  ;;  %v313_v62 = vstv %s1516_s22  ;;  %v286_v7 = vmul.f32 %v285_v59, %v1566_v53 }
  0xcb   :  { %v246_v2 = vstv %s2461_s11  ;;  %s1656_s12 = sld [smem:[#allocation3 + $0x4d]]  ;;  %v314_v11 = vmul.f32 %v313_v62, %v1511_v17  ;;  %v1790_v59 = vmul.f32 %v305_v43, %v1658_v3 }
  0xcc   :  { %s2467_s4 = sld [smem:[#allocation24_spill]]  ;;  %v247_v15 = vmul.f32 %v246_v2, %v1568_v54  ;;  %v131_v37 = vadd.f32 %v130_v12, %v127_v23  ;;  %v317_v12 = vmul.f32 %v316_v63, %v1513_v18 }
  0xcd   :  { %s2468_s26 = sld [smem:[#allocation46_spill]]  ;;  %v211_v6 = vstv %s2462_s8 }
  0xce   :  { %2463 = sst [smem:[#allocation15_spill]] %s1645_s6  ;;  %v212_v21 = vmul.f32 %v211_v6, %v1633_v44  ;;  %v248_v31 = vadd.f32 %v247_v15, %v244_v14  ;;  %v283_v6 = vadd.f32 %v282_v52, %v279_v51  ;;  %v320_v15 = vstv %s1528_s25 }
  0xcf   :  { %2464 = sst [smem:[#allocation37_spill]] %s1651_s10  ;;  %v321_v29 = vmul.f32 %v320_v15, %v1518_v20  ;;  %v302_v51 = vmul.f32 %v301_v39, %v1647_v58 }
  0xd0   :  { %s1662_s6 = sld [smem:[#allocation3 + $0x57]]  ;;  %v172_v13 = vstv %s2465_s5  ;;  %v213_v34 = vadd.f32 %v212_v21, %v209_v19  ;;  %v356_v19 = vstv %s1576_s27  ;;  %v359_v21 = vstv %s1581_s23 }
  0xd1   :  { %2466 = sst [smem:[#allocation17_spill]] %s1656_s12  ;;  %v173_v28 = vmul.f32 %v172_v13, %v1647_v58  ;;  %v287_v23 = vadd.f32 %v286_v7, %v283_v6 }
  0xd2   :  { %s2469_s9 = sld [smem:[#allocation40_spill]]  ;;  %v133_v16 = vstv %s2467_s4 }
  0xd3   :  { %s1667_s10 = sld [smem:[#allocation3 + $0x61]]  ;;  %v250_v22 = vstv %s2468_s26  ;;  %v134_v33 = vmul.f32 %v133_v16, %v1658_v3  ;;  %v174_v41 = vadd.f32 %v173_v28, %v170_v27  ;;  %v297_v27 = vstv %s1500_s3 }
  0xd4   :  { %s2471_s11 = sld [smem:[#allocation32_spill]]  ;;  %v251_v32 = vmul.f32 %v250_v22, %v1594_v10  ;;  %v318_v28 = vadd.f32 %v317_v12, %v314_v11 }
  0xd5   :  { %s1672_s12 = sld [smem:[#allocation3 + $0x6b]]  ;;  %v135_v50 = vadd.f32 %v134_v33, %v131_v37  ;;  %v360_v33 = vmul.f32 %v359_v21, %v1513_v18  ;;  %v363_v37 = vstv %s1586_s21 }
  0xd6   :  { %s1677_s8 = sld [smem:[#allocation3 + $0x75]]  ;;  %v252_v0 = vadd.f32 %v251_v32, %v248_v31  ;;  %v324_v31 = vstv %s1533_s7  ;;  %v357_v32 = vmul.f32 %v356_v19, %v1511_v17 }
  0xd7   :  { %s2474_s13 = sld [smem:[#allocation41_spill]] }
  0xd8   :  { %v215_v24 = vstv %s2469_s9  ;;  %s1682_s14 = sld [smem:[#allocation3 + $0x7f]]  ;;  %v256_v60 = vadd.f32 %v255_v46, %v252_v0  ;;  %v322_v0 = vadd.f32 %v321_v29, %v318_v28  ;;  %v325_v46 = vmul.f32 %v324_v31, %v1555_v45 }
  0xd9   :  { %2470 = sst [smem:[#allocation21_spill]] %s1667_s10  ;;  %v216_v35 = vmul.f32 %v215_v24, %v1647_v58  ;;  %v290_v24 = vmul.f32 %v289_v9, %v1568_v54  ;;  %v361_v49 = vadd.f32 %v360_v33, %v357_v32 }
  0xda   :  { %s1686_s4 = sld [smem:[#allocation3 + $0x1c]]  ;;  %v176_v30 = vstv %s2471_s11  ;;  %v260_v13 = vadd.f32 %v259_v61, %v256_v60  ;;  %v406_v61 = vstv %s1641_s30  ;;  %v326_v62 = vadd.f32 %v325_v46, %v322_v0 }
  0xdb   :  { %2472 = sst [smem:[#allocation29_spill]] %s1672_s12  ;;  %v177_v42 = vmul.f32 %v176_v30, %v1658_v3  ;;  %v217_v47 = vadd.f32 %v216_v35, %v213_v34  ;;  %v407_v11 = vmul.f32 %v406_v61, %v1518_v20 }
  0xdc   :  { %2473 = sst [smem:[#allocation44_spill]] %s1677_s8 }
  0xdd   :  { %s1690_s5 = sld [smem:[#allocation3 + $0x26]]  ;;  %v219_v38 = vstv %s2474_s13  ;;  %v178_v56 = vadd.f32 %v177_v42, %v174_v41  ;;  %v402_v41 = vstv %s1637_s1  ;;  %v298_v42 = vmul.f32 %v297_v27, %v1633_v44 }
  0xde   :  { %2475 = sst [smem:[#allocation38_spill]] %s1682_s14  ;;  %v220_v48 = vmul.f32 %v219_v38, %v1658_v3  ;;  %v291_v38 = vadd.f32 %v290_v24, %v287_v23 }
  0xdf   :  { %s1695_s26 = sld [smem:[#allocation3 + $0x30]] }
  0xe0   :  { %s1699_s16 = sld [smem:[#allocation3 + $0x3a]]  ;;  %v221_v1 = vadd.f32 %v220_v48, %v217_v47 }
  0xe1   :  { %s2476_s9 = sld [smem:[#allocation25_spill]] }
  0xe2   :  { %s2477_s11 = sld [smem:[#allocation33_spill]] }
  0xe3   :  { %s1703_s14 = sld [smem:[#allocation3 + $0x44]] }
  0xe4   :  { %s1706_s2 = sld [smem:[#allocation3 + $0x4e]] }
  0xe5   :  { %s1710_s13 = sld [smem:[#allocation3 + $0x58]]  ;;  %v449_v24 = vstv %s1695_s26 }
  0xe6   :  { %s2479_s8 = sld [smem:[#allocation47_spill]] }
  0xe7   :  { %s2480_s28 = sld [smem:[#allocation42_spill]]  ;;  %v137_v55 = vstv %s2476_s9 }
  0xe8   :  { %s1713_s12 = sld [smem:[#allocation3 + $0x62]]  ;;  %v180_v57 = vstv %s2477_s11  ;;  %v138_v4 = vadd.f32 %v137_v55, %v135_v50  ;;  %v364_v50 = vmul.f32 %v363_v37, %v1518_v20  ;;  %v400_v55 = vmul.f32 %v399_v40, %v1511_v17 }
  0xe9   :  { %s1718_s10 = sld [smem:[#allocation3 + $0x6c]]  ;;  %v181_v8 = vadd.f32 %v180_v57, %v178_v56  ;;  %v403_v56 = vmul.f32 %v402_v41, %v1513_v18  ;;  %v295_v57 = vadd.f32 %v294_v36, %v291_v38  ;;  %v450_v37 = vmul.f32 %v449_v24, %v1518_v20 }
  0xea   :  { %s1723_s15 = sld [smem:[#allocation3 + $0x76]]  ;;  %v1745_v22 = vmax.f32 %v138_v4, 0.0  ;;  %v365_v6 = vadd.f32 %v364_v50, %v361_v49 }
  0xeb   :  { %2478 = sst [smem:[#allocation22_spill]] %s1710_s13  ;;  %v1751_v26 = vmax.f32 %v181_v8, 0.0  ;;  %v404_v9 = vadd.f32 %v403_v56, %v400_v55  ;;  %v299_v19 = vadd.f32 %v298_v42, %v295_v57  ;;  %v453_v42 = vstv %s1699_s16 }
  0xec   :  { %v262_v2 = vstv %s2479_s8  ;;  %s1726_s13 = sld [smem:[#allocation3 + $0x80]] }
  0xed   :  { %v223_v5 = vstv %s2480_s28  ;;  %s1730_s0 = sld [smem:[#allocation3 + $0x1d]]  ;;  %v263_v14 = vmul.f32 %v262_v2, %v1658_v3  ;;  %v445_v2 = vstv %s1690_s5  ;;  %v303_v39 = vadd.f32 %v302_v51, %v299_v19 }
  0xee   :  { %s1735_s22 = sld [smem:[#allocation3 + $0x27]]  ;;  %v224_v16 = vadd.f32 %v223_v5, %v221_v1  ;;  %v442_v1 = vstv %s1686_s4  ;;  %v461_v19 = vstv %s1706_s2 }
  0xef   :  { %s1739_s24 = sld [smem:[#allocation3 + $0x31]]  ;;  %v264_v30 = vadd.f32 %v263_v14, %v260_v13  ;;  %v443_v13 = vmul.f32 %v442_v1, %v1511_v17  ;;  %v446_v14 = vmul.f32 %v445_v2, %v1513_v18 }
  0xf0   :  { %s1743_s8 = sld [smem:[#allocation3 + $0x3b]]  ;;  %v1762_v34 = vmax.f32 %v224_v16, 0.0 }
  0xf1   :  { %s2481_s18 = sld [smem:[#allocation48_spill]]  ;;  %v447_v36 = vadd.f32 %v446_v14, %v443_v13  ;;  %v307_v14 = vadd.f32 %v1790_v59, %v303_v39 }
  0xf2   :  { %s1749_s9 = sld [smem:[#allocation3 + $0x45]] }
  0xf3   :  { %s1755_s25 = sld [smem:[#allocation3 + $0x4f]]  ;;  %v485_v15 = vstv %s1730_s0  ;;  %v451_v51 = vadd.f32 %v450_v37, %v447_v36 }
  0xf4   :  { %s1760_s20 = sld [smem:[#allocation3 + $0x59]]  ;;  %v488_v16 = vstv %s1735_s22  ;;  %v486_v32 = vmul.f32 %v485_v15, %v1511_v17 }
  0xf5   :  { %s2482_s23 = sld [smem:[#allocation11_spill]]  ;;  %v489_v33 = vmul.f32 %v488_v16, %v1513_v18  ;;  %v492_v38 = vstv %s1739_s24 }
  0xf6   :  { %s1767_s3 = sld [smem:[#allocation3 + $0x63]]  ;;  %v493_v49 = vmul.f32 %v492_v38, %v1518_v20  ;;  %v496_v55 = vstv %s1743_s8 }
  0xf7   :  { %v266_v35 = vstv %s2481_s18  ;;  %s2483_s27 = sld [smem:[#allocation13_spill]] }
  0xf8   :  { %s1772_s7 = sld [smem:[#allocation3 + $0x6d]]  ;;  %v267_v47 = vadd.f32 %v266_v35, %v264_v30  ;;  %v408_v35 = vadd.f32 %v407_v11, %v404_v9  ;;  %v500_v13 = vstv %s1749_s9 }
  0xf9   :  { %s2484_s11 = sld [smem:[#allocation49_spill]] }
  0xfa   :  { %s1777_s28 = sld [smem:[#allocation3 + $0x77]]  ;;  %v1801_v4 = vmax.f32 %v267_v47, 0.0 }
  0xfb   :  { %v328_v48 = vstv %s2482_s23  ;;  %s1781_s17 = sld [smem:[#allocation3 + $0x81]] }
  0xfc   :  { %s2486_s21 = sld [smem:[#allocation34_spill]]  ;;  %v329_v63 = vmul.f32 %v328_v48, %v1566_v53  ;;  %v490_v48 = vadd.f32 %v489_v33, %v486_v32  ;;  %v504_v32 = vstv %s1755_s25 }
  0xfd   :  { %v367_v52 = vstv %s2483_s27  ;;  %s1787_s19 = sld [smem:[#allocation3 + $0x82]] }
  0xfe   :  { %s2487_s29 = sld [smem:[#allocation19_spill]]  ;;  %v368_v7 = vmul.f32 %v367_v52, %v1555_v45  ;;  %v330_v21 = vadd.f32 %v329_v63, %v326_v62  ;;  %v454_v52 = vmul.f32 %v453_v42, %v1555_v45  ;;  %v457_v62 = vstv %s1703_s14 }
  0xff   :  { %v309_v60 = vstv %s2484_s11  ;;  %s2488_s1 = sld [smem:[#allocation15_spill]] }
 0x100   :  { %s1794_s18 = sld [smem:[#allocation3 + $0x8c]]  ;;  %v369_v27 = vadd.f32 %v368_v7, %v365_v6  ;;  %v422_v6 = vstv %s1662_s6  ;;  %v494_v7 = vadd.f32 %v493_v49, %v490_v48  ;;  %v455_v11 = vadd.f32 %v454_v52, %v451_v51 }
 0x101   :  { %2485 = sst [smem:[#allocation30_spill]] %s1781_s17  ;;  %v310_v48 = vadd.f32 %v309_v60, %v307_v14  ;;  %v469_v49 = vstv %s1713_s12  ;;  %v477_v14 = vstv %s1723_s15 }
 0x102   :  { %s1799_s23 = sld [smem:[#allocation3 + $0x96]]  ;;  %v332_v5 = vstv %s2486_s21 }
 0x103   :  { %s1805_s27 = sld [smem:[#allocation3 + $0xa0]]  ;;  %v333_v23 = vmul.f32 %v332_v5, %v1568_v54  ;;  %v528_v39 = vstv %s1787_s19 }
 0x104   :  { %s2489_s30 = sld [smem:[#allocation12_spill]]  ;;  %v371_v8 = vstv %s2487_s29 }
 0x105   :  { %s2490_s17 = sld [smem:[#allocation14_spill]]  ;;  %v410_v12 = vstv %s2488_s1  ;;  %v372_v28 = vmul.f32 %v371_v8, %v1566_v53  ;;  %v334_v40 = vadd.f32 %v333_v23, %v330_v21  ;;  %v497_v8 = vmul.f32 %v496_v55, %v1555_v45 }
 0x106   :  { %s1810_s4 = sld [smem:[#allocation3 + $0xaa]]  ;;  %v411_v30 = vmul.f32 %v410_v12, %v1555_v45  ;;  %v458_v12 = vmul.f32 %v457_v62, %v1566_v53 }
 0x107   :  { %s2491_s5 = sld [smem:[#allocation37_spill]]  ;;  %v373_v18 = vadd.f32 %v372_v28, %v369_v27  ;;  %v498_v27 = vadd.f32 %v497_v8, %v494_v7  ;;  %v501_v28 = vmul.f32 %v500_v13, %v1566_v53 }
 0x108   :  { %s1816_s21 = sld [smem:[#allocation3 + $0xb4]]  ;;  %v412_v50 = vadd.f32 %v411_v30, %v408_v35  ;;  %v459_v30 = vadd.f32 %v458_v12, %v455_v11 }
 0x109   :  { %s1820_s29 = sld [smem:[#allocation3 + $0xbe]]  ;;  %v539_v12 = vstv %s1805_s27 }
 0x10a   :  { %v336_v25 = vstv %s2489_s30  ;;  %s1825_s1 = sld [smem:[#allocation3 + $0xc8]] }
 0x10b   :  { %v375_v29 = vstv %s2490_s17  ;;  %s2493_s0 = sld [smem:[#allocation18_spill]]  ;;  %v337_v41 = vmul.f32 %v336_v25, %v1594_v10  ;;  %v423_v25 = vmul.f32 %v422_v6, %v1594_v10  ;;  %v473_v6 = vstv %s1718_s10 }
 0x10c   :  { %s2494_s22 = sld [smem:[#allocation27_spill]]  ;;  %v376_v43 = vmul.f32 %v375_v29, %v1568_v54 }
 0x10d   :  { %v414_v31 = vstv %s2491_s5  ;;  %s1831_s26 = sld [smem:[#allocation3 + $0xd2]]  ;;  %v338_v56 = vadd.f32 %v337_v41, %v334_v40  ;;  %v531_v40 = vstv %s1794_s18 }
 0x10e   :  { %s2496_s30 = sld [smem:[#allocation17_spill]]  ;;  %v415_v46 = vmul.f32 %v414_v31, %v1566_v53  ;;  %v377_v20 = vadd.f32 %v376_v43, %v373_v18  ;;  %v462_v31 = vmul.f32 %v461_v19, %v1568_v54  ;;  %v505_v18 = vmul.f32 %v504_v32, %v1568_v54 }
 0x10f   :  { %s1835_s17 = sld [smem:[#allocation3 + $0xdc]]  ;;  %v532_v51 = vmul.f32 %v531_v40, %v1751_v26 }
 0x110   :  { %2492 = sst [smem:[#allocation23_spill]] %s1825_s1  ;;  %v416_v9 = vadd.f32 %v415_v46, %v412_v50  ;;  %v529_v50 = vmul.f32 %v528_v39, %v1745_v22 }
 0x111   :  { %s1839_s5 = sld [smem:[#allocation3 + $0xe6]]  ;;  %v340_v17 = vstv %s2493_s0 }
 0x112   :  { %v379_v0 = vstv %s2494_s22  ;;  %s1844_s1 = sld [smem:[#allocation3 + $0x83]]  ;;  %v341_v57 = vmul.f32 %v340_v17, %v1633_v44  ;;  %v502_v17 = vadd.f32 %v501_v28, %v498_v27  ;;  %v533_v7 = vadd.f32 %v532_v51, %v529_v50 }
 0x113   :  { %2495 = sst [smem:[#allocation45_spill]] %s1831_s26  ;;  %v380_v1 = vmul.f32 %v379_v0, %v1594_v10  ;;  %v463_v0 = vadd.f32 %v462_v31, %v459_v30  ;;  %v543_v30 = vstv %s1810_s4  ;;  %v481_v50 = vstv %s1726_s13 }
 0x114   :  { %s2499_s26 = sld [smem:[#allocation26_spill]]  ;;  %v418_v47 = vstv %s2496_s30  ;;  %v342_v15 = vadd.f32 %v341_v57, %v338_v56  ;;  %v535_v56 = vstv %s1799_s23  ;;  %v506_v60 = vadd.f32 %v505_v18, %v502_v17 }
 0x115   :  { %2497 = sst [smem:[#allocation39_spill]] %s1835_s17  ;;  %v419_v5 = vmul.f32 %v418_v47, %v1568_v54  ;;  %v381_v21 = vadd.f32 %v380_v1, %v377_v20  ;;  %v508_v47 = vstv %s1760_s20  ;;  %v470_v1 = vmul.f32 %v469_v49, %v1633_v44 }
 0x116   :  { %s2500_s24 = sld [smem:[#allocation43_spill]]  ;;  %v509_v62 = vmul.f32 %v508_v47, %v1594_v10  ;;  %v536_v8 = vmul.f32 %v535_v56, %v1762_v34  ;;  %v547_v17 = vstv %s1816_s21 }
 0x117   :  { %2498 = sst [smem:[#allocation31_spill]] %s1839_s5  ;;  %v420_v29 = vadd.f32 %v419_v5, %v416_v9  ;;  %v1932_v5 = vmax.f32 %v310_v48, 0.0 }
 0x118   :  { %s2501_s17 = sld [smem:[#allocation36_spill]] }
 0x119   :  { %s1849_s16 = sld [smem:[#allocation3 + $0x8d]]  ;;  %v424_v43 = vadd.f32 %v423_v25, %v420_v29  ;;  %v540_v25 = vmul.f32 %v539_v12, %v1801_v4  ;;  %v478_v29 = vmul.f32 %v477_v14, %v1658_v3 }
 0x11a   :  { %s1853_s0 = sld [smem:[#allocation3 + $0x97]]  ;;  %v344_v61 = vstv %s2499_s26 }
 0x11b   :  { %s1858_s22 = sld [smem:[#allocation3 + $0xa1]]  ;;  %v345_v16 = vmul.f32 %v344_v61, %v1647_v58 }
 0x11c   :  { %v348_v63 = vstv %s2500_s24  ;;  %s1863_s30 = sld [smem:[#allocation3 + $0xab]] }
 0x11d   :  { %s2502_s8 = sld [smem:[#allocation16_spill]]  ;;  %v349_v45 = vmul.f32 %v348_v63, %v1658_v3  ;;  %v346_v33 = vadd.f32 %v345_v16, %v342_v15  ;;  %v510_v15 = vadd.f32 %v509_v62, %v506_v60 }
 0x11e   :  { %v383_v2 = vstv %s2501_s17  ;;  %s1868_s26 = sld [smem:[#allocation3 + $0xb5]] }
 0x11f   :  { %s2503_s14 = sld [smem:[#allocation21_spill]]  ;;  %v384_v23 = vmul.f32 %v383_v2, %v1633_v44  ;;  %v350_v54 = vadd.f32 %v349_v45, %v346_v33  ;;  %v512_v2 = vstv %s1767_s3  ;;  %v574_v27 = vstv %s1849_s16 }
 0x120   :  { %s1872_s24 = sld [smem:[#allocation3 + $0xbf]]  ;;  %v513_v16 = vmul.f32 %v512_v2, %v1633_v44 }
 0x121   :  { %s1877_s6 = sld [smem:[#allocation3 + $0xc9]]  ;;  %v385_v53 = vadd.f32 %v384_v23, %v381_v21  ;;  %v474_v21 = vmul.f32 %v473_v6, %v1647_v58  ;;  %v516_v23 = vstv %s1772_s7 }
 0x122   :  { %s2506_s17 = sld [smem:[#allocation35_spill]]  ;;  %v514_v31 = vadd.f32 %v513_v16, %v510_v15  ;;  %v517_v32 = vmul.f32 %v516_v23, %v1647_v58 }
 0x123   :  { %s2507_s5 = sld [smem:[#allocation22_spill]]  ;;  %v387_v24 = vstv %s2502_s8 }
 0x124   :  { %s1882_s9 = sld [smem:[#allocation3 + $0xd3]]  ;;  %v388_v36 = vmul.f32 %v387_v24, %v1647_v58  ;;  %v537_v24 = vadd.f32 %v536_v8, %v533_v7 }
 0x125   :  { %v426_v59 = vstv %s2503_s14  ;;  %s1887_s2 = sld [smem:[#allocation3 + $0xdd]] }
 0x126   :  { %2504 = sst [smem:[#allocation24_spill]] %s1872_s24  ;;  %v427_v41 = vmul.f32 %v426_v59, %v1633_v44  ;;  %v389_v52 = vadd.f32 %v388_v36, %v385_v53  ;;  %v571_v59 = vstv %s1844_s1  ;;  %v541_v40 = vadd.f32 %v540_v25, %v537_v24 }
 0x127   :  { %2505 = sst [smem:[#allocation46_spill]] %s1877_s6  ;;  %v572_v53 = vmul.f32 %v571_v59, %v1745_v22  ;;  %v590_v25 = vstv %s1868_s26 }
 0x128   :  { %s2508_s24 = sld [smem:[#allocation20_spill]]  ;;  %v352_v35 = vstv %s2506_s17  ;;  %v428_v63 = vadd.f32 %v427_v41, %v424_v43  ;;  %v544_v41 = vmul.f32 %v543_v30, %v1932_v5 }
 0x129   :  { %s2510_s6 = sld [smem:[#allocation29_spill]]  ;;  %v465_v37 = vstv %s2507_s5 }
 0x12a   :  { %s1891_s8 = sld [smem:[#allocation3 + $0xe7]]  ;;  %v466_v46 = vmul.f32 %v465_v37, %v1594_v10  ;;  %v353_v10 = vadd.f32 %v352_v35, %v350_v54  ;;  %v520_v37 = vstv %s1777_s28 }
 0x12b   :  { %2509 = sst [smem:[#allocation40_spill]] %s1887_s2  ;;  %v521_v47 = vmul.f32 %v520_v37, %v1658_v3 }
 0x12c   :  { %s1896_s14 = sld [smem:[#allocation3 + $0x84]]  ;;  %v467_v20 = vadd.f32 %v466_v46, %v463_v0  ;;  %v1956_v44 = vmax.f32 %v353_v10, 0.0  ;;  %v518_v46 = vadd.f32 %v517_v32, %v514_v31 }
 0x12d   :  { %s1901_s2 = sld [smem:[#allocation3 + $0x8e]] }
 0x12e   :  { %v391_v38 = vstv %s2508_s24  ;;  %s1906_s25 = sld [smem:[#allocation3 + $0x98]]  ;;  %v471_v45 = vadd.f32 %v470_v1, %v467_v20  ;;  %v548_v56 = vmul.f32 %v547_v17, %v1956_v44  ;;  %v522_v62 = vadd.f32 %v521_v47, %v518_v46 }
 0x12f   :  { %v430_v42 = vstv %s2510_s6  ;;  %s2511_s5 = sld [smem:[#allocation44_spill]]  ;;  %v392_v55 = vmul.f32 %v391_v38, %v1658_v3  ;;  %v575_v38 = vmul.f32 %v574_v27, %v1751_v26 }
 0x130   :  { %s1910_s24 = sld [smem:[#allocation3 + $0xa2]]  ;;  %v431_v57 = vmul.f32 %v430_v42, %v1647_v58  ;;  %v475_v36 = vadd.f32 %v474_v21, %v471_v45  ;;  %v578_v42 = vstv %s1853_s0 }
 0x131   :  { %s1917_s19 = sld [smem:[#allocation3 + $0xac]]  ;;  %v393_v9 = vadd.f32 %v392_v55, %v389_v52  ;;  %v576_v51 = vadd.f32 %v575_v38, %v572_v53  ;;  %v579_v54 = vmul.f32 %v578_v42, %v1762_v34  ;;  %v545_v55 = vadd.f32 %v544_v41, %v541_v40 }
 0x132   :  { %s1921_s18 = sld [smem:[#allocation3 + $0xb6]]  ;;  %v432_v19 = vadd.f32 %v431_v57, %v428_v63  ;;  %v614_v33 = vstv %s1896_s14  ;;  %v479_v49 = vadd.f32 %v478_v29, %v475_v36  ;;  %v582_v57 = vstv %s1858_s22 }
 0x133   :  { %s2512_s20 = sld [smem:[#allocation28_spill]]  ;;  %v617_v35 = vstv %s1901_s2  ;;  %v615_v18 = vmul.f32 %v614_v33, %v1745_v22  ;;  %v580_v2 = vadd.f32 %v579_v54, %v576_v51  ;;  %v583_v6 = vmul.f32 %v582_v57, %v1801_v4 }
 0x134   :  { %s1926_s12 = sld [smem:[#allocation3 + $0xc0]]  ;;  %v618_v43 = vmul.f32 %v617_v35, %v1751_v26  ;;  %v621_v48 = vstv %s1906_s25  ;;  %v482_v20 = vadd.f32 %v481_v50, %v479_v49  ;;  %v549_v8 = vadd.f32 %v548_v56, %v545_v55 }
 0x135   :  { %v434_v61 = vstv %s2511_s5  ;;  %s1930_s11 = sld [smem:[#allocation3 + $0xca]]  ;;  %v622_v60 = vmul.f32 %v621_v48, %v1762_v34  ;;  %v591_v36 = vmul.f32 %v590_v25, %v1956_v44 }
 0x136   :  { %s1936_s23 = sld [smem:[#allocation3 + $0xd4]]  ;;  %v435_v13 = vmul.f32 %v434_v61, %v1658_v3  ;;  %v551_v3 = vstv %s1820_s29  ;;  %v619_v61 = vadd.f32 %v618_v43, %v615_v18  ;;  %v625_v63 = vstv %s1910_s24 }
 0x137   :  { %s1940_s6 = sld [smem:[#allocation3 + $0xde]]  ;;  %v629_v15 = vstv %s1917_s19  ;;  %v2020_v16 = vmax.f32 %v482_v20, 0.0 }
 0x138   :  { %s1945_s10 = sld [smem:[#allocation3 + $0xe8]]  ;;  %v436_v39 = vadd.f32 %v435_v13, %v432_v19  ;;  %v623_v12 = vadd.f32 %v622_v60, %v619_v61  ;;  %v626_v13 = vmul.f32 %v625_v63, %v1801_v4  ;;  %v584_v19 = vadd.f32 %v583_v6, %v580_v2 }
 0x139   :  { %v395_v11 = vstv %s2512_s20  ;;  %s1949_s3 = sld [smem:[#allocation3 + $0x85]]  ;;  %v630_v27 = vmul.f32 %v629_v15, %v1932_v5  ;;  %v633_v31 = vstv %s1921_s18 }
 0x13a   :  { %s1954_s15 = sld [smem:[#allocation3 + $0x8f]]  ;;  %v396_v28 = vadd.f32 %v395_v11, %v393_v9  ;;  %v586_v9 = vstv %s1863_s30  ;;  %v627_v59 = vadd.f32 %v626_v13, %v623_v12  ;;  %v634_v41 = vmul.f32 %v633_v31, %v1956_v44 }
 0x13b   :  { %s1960_s27 = sld [smem:[#allocation3 + $0x99]]  ;;  %v587_v45 = vmul.f32 %v586_v9, %v1932_v5  ;;  %v637_v17 = vstv %s1926_s12  ;;  %v641_v56 = vstv %s1930_s11 }
 0x13c   :  { %s2513_s7 = sld [smem:[#allocation38_spill]]  ;;  %v1982_v0 = vmax.f32 %v396_v28, 0.0  ;;  %v631_v40 = vadd.f32 %v630_v27, %v627_v59  ;;  %v645_v9 = vstv %s1936_s23 }
 0x13d   :  { %s1965_s1 = sld [smem:[#allocation3 + $0xa3]]  ;;  %v588_v35 = vadd.f32 %v587_v45, %v584_v19  ;;  %v649_v25 = vstv %s1940_s6 }
 0x13e   :  { %s1970_s16 = sld [smem:[#allocation3 + $0xad]]  ;;  %v552_v10 = vmul.f32 %v551_v3, %v1982_v0  ;;  %v635_v54 = vadd.f32 %v634_v41, %v631_v40 }
 0x13f   :  { %s1974_s4 = sld [smem:[#allocation3 + $0xb7]]  ;;  %v657_v28 = vstv %s1949_s3  ;;  %v592_v18 = vadd.f32 %v591_v36, %v588_v35 }
 0x140   :  { %s1980_s28 = sld [smem:[#allocation3 + $0xc1]]  ;;  %v553_v21 = vadd.f32 %v552_v10, %v549_v8  ;;  %v660_v29 = vstv %s1954_s15  ;;  %v658_v38 = vmul.f32 %v657_v28, %v1745_v22 }
 0x141   :  { %s1986_s17 = sld [smem:[#allocation3 + $0xcb]]  ;;  %v664_v42 = vstv %s1960_s27 }
 0x142   :  { %v438_v58 = vstv %s2513_s7  ;;  %s2514_s21 = sld [smem:[#allocation30_spill]]  ;;  %v665_v51 = vmul.f32 %v664_v42, %v1762_v34 }
 0x143   :  { %s1990_s0 = sld [smem:[#allocation3 + $0xd5]]  ;;  %v439_v52 = vadd.f32 %v438_v58, %v436_v39  ;;  %v661_v39 = vmul.f32 %v660_v29, %v1751_v26  ;;  %v668_v55 = vstv %s1965_s1 }
 0x144   :  { %s1994_s2 = sld [smem:[#allocation3 + $0xdf]]  ;;  %v669_v6 = vmul.f32 %v668_v55, %v1801_v4 }
 0x145   :  { %s2515_s14 = sld [smem:[#allocation23_spill]]  ;;  %v2007_v7 = vmax.f32 %v439_v52, 0.0  ;;  %v662_v50 = vadd.f32 %v661_v39, %v658_v38  ;;  %v638_v52 = vmul.f32 %v637_v17, %v1982_v0  ;;  %v676_v29 = vstv %s1974_s4 }
 0x146   :  { %s1998_s13 = sld [smem:[#allocation3 + $0xe9]]  ;;  %v610_v38 = vstv %s1891_s8 }
 0x147   :  { %s2001_s25 = sld [smem:[#allocation3 + $0x86]]  ;;  %v666_v2 = vadd.f32 %v665_v51, %v662_v50  ;;  %v639_v8 = vadd.f32 %v638_v52, %v635_v54  ;;  %v642_v10 = vmul.f32 %v641_v56, %v2007_v7  ;;  %v684_v51 = vstv %s1986_s17 }
 0x148   :  { %v524_v1 = vstv %s2514_s21  ;;  %s2005_s22 = sld [smem:[#allocation3 + $0x90]] }
 0x149   :  { %s2517_s29 = sld [smem:[#allocation45_spill]]  ;;  %v525_v14 = vadd.f32 %v524_v1, %v522_v62  ;;  %v602_v1 = vstv %s1882_s9  ;;  %v670_v59 = vadd.f32 %v669_v6, %v666_v2  ;;  %v643_v28 = vadd.f32 %v642_v10, %v639_v8 }
 0x14a   :  { %s2011_s5 = sld [smem:[#allocation3 + $0x9a]]  ;;  %v603_v45 = vmul.f32 %v602_v1, %v2020_v16  ;;  %v685_v1 = vmul.f32 %v684_v51, %v2007_v7  ;;  %v688_v10 = vstv %s1990_s0 }
 0x14b   :  { %v555_v11 = vstv %s2515_s14  ;;  %s2015_s24 = sld [smem:[#allocation3 + $0xa4]]  ;;  %v2035_v30 = vmax.f32 %v525_v14, 0.0 }
 0x14c   :  { %2516 = sst [smem:[#allocation32_spill]] %s1998_s13  ;;  %v556_v23 = vmul.f32 %v555_v11, %v2007_v7  ;;  %v672_v11 = vstv %s1970_s16 }
 0x14d   :  { %s2018_s20 = sld [smem:[#allocation3 + $0xae]]  ;;  %v700_v46 = vstv %s2001_s25  ;;  %v673_v27 = vmul.f32 %v672_v11, %v1932_v5  ;;  %v650_v41 = vmul.f32 %v649_v25, %v2035_v30 }
 0x14e   :  { %s2518_s30 = sld [smem:[#allocation39_spill]]  ;;  %v557_v37 = vadd.f32 %v556_v23, %v553_v21  ;;  %v703_v47 = vstv %s2005_s22  ;;  %v701_v57 = vmul.f32 %v700_v46, %v1745_v22 }
 0x14f   :  { %s2023_s7 = sld [smem:[#allocation3 + $0xb8]]  ;;  %v559_v24 = vstv %s2517_s29  ;;  %v704_v3 = vmul.f32 %v703_v47, %v1751_v26  ;;  %v674_v42 = vadd.f32 %v673_v27, %v670_v59 }
 0x150   :  { %s2519_s21 = sld [smem:[#allocation24_spill]]  ;;  %v560_v32 = vmul.f32 %v559_v24, %v2020_v16  ;;  %v707_v63 = vstv %s2011_s5  ;;  %v646_v24 = vmul.f32 %v645_v9, %v2020_v16 }
 0x151   :  { %s2028_s14 = sld [smem:[#allocation3 + $0xc2]]  ;;  %v705_v12 = vadd.f32 %v704_v3, %v701_v57  ;;  %v708_v13 = vmul.f32 %v707_v63, %v1762_v34  ;;  %v711_v23 = vstv %s2015_s24 }
 0x152   :  { %s2033_s19 = sld [smem:[#allocation3 + $0xcc]]  ;;  %v561_v48 = vadd.f32 %v560_v32, %v557_v37  ;;  %v712_v35 = vmul.f32 %v711_v23, %v1801_v4  ;;  %v647_v17 = vadd.f32 %v646_v24, %v643_v28 }
 0x153   :  { %s2038_s13 = sld [smem:[#allocation3 + $0xd6]]  ;;  %v715_v39 = vstv %s2018_s20 }
 0x154   :  { %v563_v33 = vstv %s2518_s30  ;;  %s2043_s26 = sld [smem:[#allocation3 + $0xe0]] }
 0x155   :  { %s2520_s3 = sld [smem:[#allocation46_spill]]  ;;  %v564_v58 = vmul.f32 %v563_v33, %v2035_v30  ;;  %v709_v33 = vadd.f32 %v708_v13, %v705_v12  ;;  %v719_v54 = vstv %s2023_s7  ;;  %v651_v13 = vadd.f32 %v650_v41, %v647_v17 }
 0x156   :  { %v594_v53 = vstv %s2519_s21  ;;  %s2048_s18 = sld [smem:[#allocation3 + $0xea]]  ;;  %v720_v6 = vmul.f32 %v719_v54, %v1956_v44 }
 0x157   :  { %s2052_s15 = sld [smem:[#allocation3 + $0x87]]  ;;  %v595_v43 = vmul.f32 %v594_v53, %v1982_v0  ;;  %v565_v20 = vadd.f32 %v564_v58, %v561_v48  ;;  %v677_v58 = vmul.f32 %v676_v29, %v1956_v44  ;;  %v713_v47 = vadd.f32 %v712_v35, %v709_v33 }
 0x158   :  { %s2056_s29 = sld [smem:[#allocation3 + $0x91]]  ;;  %v716_v48 = vmul.f32 %v715_v39, %v1932_v5  ;;  %v723_v9 = vstv %s2028_s14  ;;  %v689_v29 = vmul.f32 %v688_v10, %v2020_v16 }
 0x159   :  { %s2521_s30 = sld [smem:[#allocation31_spill]]  ;;  %v596_v60 = vadd.f32 %v595_v43, %v592_v18  ;;  %v680_v18 = vstv %s1980_s28  ;;  %v678_v56 = vadd.f32 %v677_v58, %v674_v42  ;;  %v724_v27 = vmul.f32 %v723_v9, %v1982_v0 }
 0x15a   :  { %s2061_s21 = sld [smem:[#allocation3 + $0x9b]]  ;;  %v681_v57 = vmul.f32 %v680_v18, %v1982_v0  ;;  %v717_v2 = vadd.f32 %v716_v48, %v713_v47  ;;  %v731_v39 = vstv %s2038_s13 }
 0x15b   :  { %v598_v49 = vstv %s2520_s3  ;;  %s2065_s27 = sld [smem:[#allocation3 + $0xa5]] }
 0x15c   :  { %s2069_s12 = sld [smem:[#allocation3 + $0xaf]]  ;;  %v599_v62 = vmul.f32 %v598_v49, %v2007_v7  ;;  %v721_v59 = vadd.f32 %v720_v6, %v717_v2 }
 0x15d   :  { %s2074_s25 = sld [smem:[#allocation3 + $0xb9]]  ;;  %v743_v14 = vstv %s2052_s15 }
 0x15e   :  { %s2079_s22 = sld [smem:[#allocation3 + $0xc3]]  ;;  %v746_v15 = vstv %s2056_s29  ;;  %v600_v19 = vadd.f32 %v599_v62, %v596_v60  ;;  %v744_v31 = vmul.f32 %v743_v14, %v1745_v22  ;;  %v682_v14 = vadd.f32 %v681_v57, %v678_v56 }
 0x15f   :  { %v567_v61 = vstv %s2521_s30  ;;  %s2522_s11 = sld [smem:[#allocation40_spill]]  ;;  %v747_v32 = vmul.f32 %v746_v15, %v1751_v26  ;;  %v692_v15 = vstv %s1994_s2  ;;  %v725_v58 = vadd.f32 %v724_v27, %v721_v59 }
 0x160   :  { %s2083_s1 = sld [smem:[#allocation3 + $0xcd]]  ;;  %v750_v36 = vstv %s2061_s21  ;;  %v2114_v37 = vadd.f32 %v567_v61, %v565_v20  ;;  %v604_v40 = vadd.f32 %v603_v45, %v600_v19  ;;  %v653_v45 = vstv %s1945_s10 }
 0x161   :  { %s2088_s3 = sld [smem:[#allocation3 + $0xd7]]  ;;  %v748_v43 = vadd.f32 %v747_v32, %v744_v31  ;;  %v751_v46 = vmul.f32 %v750_v36, %v1762_v34  ;;  %v754_v49 = vstv %s2065_s27  ;;  %v693_v31 = vmul.f32 %v692_v15, %v2035_v30 }
 0x162   :  { %s2093_s9 = sld [smem:[#allocation3 + $0xe1]]  ;;  %v569_v60 = vmax.f32 %v2114_v37, 0.0  ;;  %v755_v20 = vmul.f32 %v754_v49, %v1801_v4  ;;  %v758_v8 = vstv %s2069_s12  ;;  %v2179_v35 = vadd.f32 %v653_v45, %v651_v13 }
 0x163   :  { %s2098_s5 = sld [smem:[#allocation3 + $0xeb]]  ;;  %v752_v63 = vadd.f32 %v751_v46, %v748_v43  ;;  %v759_v24 = vmul.f32 %v758_v8, %v1932_v5  ;;  %v762_v28 = vstv %s2074_s25  ;;  %v686_v36 = vadd.f32 %v685_v1, %v682_v14 }
 0x164   :  { %s2103_s23 = sld [smem:[#allocation3 + $0x88]]  ;;  %v763_v41 = vmul.f32 %v762_v28, %v1956_v44  ;;  %v766_v17 = vstv %s2079_s22  ;;  %v655_v9 = vmax.f32 %v2179_v35, 0.0  ;;  %v739_v27 = vstv %s2048_s18 }
 0x165   :  { %v606_v21 = vstv %s2522_s11  ;;  %s2108_s16 = sld [smem:[#allocation3 + $0x92]]  ;;  %v756_v23 = vadd.f32 %v755_v20, %v752_v63  ;;  %v767_v57 = vmul.f32 %v766_v17, %v1982_v0 }
 0x166   :  { %s2112_s6 = sld [smem:[#allocation3 + $0x9c]]  ;;  %v607_v53 = vmul.f32 %v606_v21, %v2035_v30  ;;  %v727_v21 = vstv %s2033_s19  ;;  %v770_v63 = vstv %s2083_s1 }
 0x167   :  { %s2119_s4 = sld [smem:[#allocation3 + $0xa6]]  ;;  %v771_v15 = vmul.f32 %v770_v63, %v2007_v7 }
 0x168   :  { %s2123_s24 = sld [smem:[#allocation3 + $0xb0]]  ;;  %v608_v62 = vadd.f32 %v607_v53, %v604_v40  ;;  %v728_v53 = vmul.f32 %v727_v21, %v2007_v7  ;;  %v760_v40 = vadd.f32 %v759_v24, %v756_v23 }
 0x169   :  { %s2127_s8 = sld [smem:[#allocation3 + $0xba]] }
 0x16a   :  { %v786_v50 = vstv %s2103_s23  ;;  %s2132_s20 = sld [smem:[#allocation3 + $0xc4]]  ;;  %v2168_v25 = vadd.f32 %v610_v38, %v608_v62  ;;  %v764_v56 = vadd.f32 %v763_v41, %v760_v40  ;;  %v735_v62 = vstv %s2043_s26 }
 0x16b   :  { %v787_v52 = vmul.f32 %v786_v50, %v1745_v22  ;;  %v789_v55 = vstv %s2108_s16  ;;  %s2138_s28 = sld [smem:[#allocation3 + $0xce]]  ;;  %v690_v50 = vadd.f32 %v689_v29, %v686_v36  ;;  %v736_v45 = vmul.f32 %v735_v62, %v2035_v30 }
 0x16c   :  { %v790_v3 = vmul.f32 %v789_v55, %v1751_v26  ;;  %v793_v61 = vstv %s2112_s6  ;;  %s2143_s15 = sld [smem:[#allocation3 + $0xd8]]  ;;  %v732_v55 = vmul.f32 %v731_v39, %v2020_v16  ;;  %v612_v10 = vmax.f32 %v2168_v25, 0.0 }
 0x16d   :  { %s2147_s17 = sld [smem:[#allocation3 + $0xe2]]  ;;  %v794_v12 = vmul.f32 %v793_v61, %v1762_v34  ;;  %v797_v19 = vstv %s2119_s4  ;;  %v729_v61 = vadd.f32 %v728_v53, %v725_v58  ;;  %v694_v13 = vadd.f32 %v693_v31, %v690_v50 }
 0x16e   :  { %s2152_s7 = sld [smem:[#allocation3 + $0xec]]  ;;  %v791_v11 = vadd.f32 %v790_v3, %v787_v52  ;;  %v798_v33 = vmul.f32 %v797_v19, %v1801_v4  ;;  %v801_v38 = vstv %s2123_s24  ;;  %v768_v14 = vadd.f32 %v767_v57, %v764_v56 }
 0x16f   :  { %s2157_s29 = sld [smem:[#allocation3 + $0x89]]  ;;  %v802_v47 = vmul.f32 %v801_v38, %v1932_v5  ;;  %v805_v51 = vstv %s2127_s8  ;;  %v774_v19 = vstv %s2088_s3  ;;  %v733_v59 = vadd.f32 %v732_v55, %v729_v61 }
 0x170   :  { %s2161_s30 = sld [smem:[#allocation3 + $0x93]]  ;;  %v795_v32 = vadd.f32 %v794_v12, %v791_v11  ;;  %v806_v2 = vmul.f32 %v805_v51, %v1956_v44  ;;  %v809_v12 = vstv %s2132_s20  ;;  %v775_v31 = vmul.f32 %v774_v19, %v2020_v16 }
 0x171   :  { %s2166_s0 = sld [smem:[#allocation3 + $0x9d]]  ;;  %v810_v29 = vmul.f32 %v809_v12, %v1982_v0  ;;  %v772_v53 = vadd.f32 %v771_v15, %v768_v14  ;;  %v782_v19 = vstv %s2098_s5 }
 0x172   :  { %s2172_s2 = sld [smem:[#allocation3 + $0xa7]]  ;;  %v799_v46 = vadd.f32 %v798_v33, %v795_v32  ;;  %v778_v32 = vstv %s2093_s9  ;;  %v813_v33 = vstv %s2138_s28 }
 0x173   :  { %s2177_s10 = sld [smem:[#allocation3 + $0xb1]]  ;;  %v776_v63 = vadd.f32 %v775_v31, %v772_v53 }
 0x174   :  { %s2183_s14 = sld [smem:[#allocation3 + $0xbb]]  ;;  %v803_v1 = vadd.f32 %v802_v47, %v799_v46 }
 0x175   :  { %v829_v42 = vstv %s2157_s29  ;;  %s2188_s19 = sld [smem:[#allocation3 + $0xc5]] }
 0x176   :  { %v830_v18 = vmul.f32 %v829_v42, %v1745_v22  ;;  %v832_v43 = vstv %s2161_s30  ;;  %s2193_s21 = sld [smem:[#allocation3 + $0xcf]]  ;;  %v807_v28 = vadd.f32 %v806_v2, %v803_v1 }
 0x177   :  { %v833_v48 = vmul.f32 %v832_v43, %v1751_v26  ;;  %v836_v49 = vstv %s2166_s0  ;;  %s2198_s13 = sld [smem:[#allocation3 + $0xd9]]  ;;  %v814_v43 = vmul.f32 %v813_v33, %v2007_v7 }
 0x178   :  { %v837_v54 = vmul.f32 %v836_v49, %v1762_v34  ;;  %v840_v52 = vstv %s2172_s2  ;;  %s2203_s27 = sld [smem:[#allocation3 + $0xe3]] }
 0x179   :  { %s2523_s12 = sld [smem:[#allocation32_spill]]  ;;  %v834_v3 = vadd.f32 %v833_v48, %v830_v18  ;;  %v841_v20 = vmul.f32 %v840_v52, %v1801_v4  ;;  %v844_v8 = vstv %s2177_s10  ;;  %v811_v18 = vadd.f32 %v810_v29, %v807_v28 }
 0x17a   :  { %s2207_s25 = sld [smem:[#allocation3 + $0xed]]  ;;  %v845_v23 = vmul.f32 %v844_v8, %v1932_v5  ;;  %v848_v24 = vstv %s2183_s14  ;;  %v817_v48 = vstv %s2143_s15  ;;  %v779_v52 = vmul.f32 %v778_v32, %v2035_v30 }
 0x17b   :  { %s2212_s22 = sld [smem:[#allocation3 + $0x8a]]  ;;  %v838_v6 = vadd.f32 %v837_v54, %v834_v3  ;;  %v849_v38 = vmul.f32 %v848_v24, %v1956_v44  ;;  %v852_v42 = vstv %s2188_s19  ;;  %v737_v54 = vadd.f32 %v736_v45, %v733_v59 }
 0x17c   :  { %s2216_s11 = sld [smem:[#allocation3 + $0x94]]  ;;  %v853_v55 = vmul.f32 %v852_v42, %v1982_v0  ;;  %v856_v3 = vstv %s2193_s21  ;;  %v818_v1 = vmul.f32 %v817_v48, %v2020_v16  ;;  %v821_v8 = vstv %s2147_s17 }
 0x17d   :  { %s2222_s26 = sld [smem:[#allocation3 + $0x9e]]  ;;  %v842_v21 = vadd.f32 %v841_v20, %v838_v6  ;;  %v815_v20 = vadd.f32 %v814_v43, %v811_v18  ;;  %v2282_v15 = vadd.f32 %v739_v27, %v737_v54  ;;  %v857_v45 = vmul.f32 %v856_v3, %v2007_v7 }
 0x17e   :  { %s2226_s1 = sld [smem:[#allocation3 + $0xa8]]  ;;  %v780_v59 = vadd.f32 %v779_v52, %v776_v63  ;;  %v822_v27 = vmul.f32 %v821_v8, %v2035_v30 }
 0x17f   :  { %v696_v11 = vstv %s2523_s12  ;;  %s2231_s23 = sld [smem:[#allocation3 + $0xb2]]  ;;  %v846_v41 = vadd.f32 %v845_v23, %v842_v21  ;;  %v819_v28 = vadd.f32 %v818_v1, %v815_v20  ;;  %v741_v3 = vmax.f32 %v2282_v15, 0.0 }
 0x180   :  { %s2235_s16 = sld [smem:[#allocation3 + $0xbc]]  ;;  %v2276_v6 = vadd.f32 %v696_v11, %v694_v13  ;;  %v860_v11 = vstv %s2198_s13 }
 0x181   :  { %v872_v36 = vstv %s2212_s22  ;;  %s2241_s3 = sld [smem:[#allocation3 + $0xc6]]  ;;  %v850_v57 = vadd.f32 %v849_v38, %v846_v41  ;;  %v861_v53 = vmul.f32 %v860_v11, %v2020_v16 }
 0x182   :  { %v873_v39 = vmul.f32 %v872_v36, %v1745_v22  ;;  %v875_v40 = vstv %s2216_s11  ;;  %s2246_s18 = sld [smem:[#allocation3 + $0xd0]] }
 0x183   :  { %v876_v58 = vmul.f32 %v875_v40, %v1751_v26  ;;  %v879_v17 = vstv %s2222_s26  ;;  %s2251_s9 = sld [smem:[#allocation3 + $0xda]]  ;;  %v854_v23 = vadd.f32 %v853_v55, %v850_v57  ;;  %v698_v57 = vmax.f32 %v2276_v6, 0.0  ;;  %s1324_s26 = smov [#allocation7]  }
 0x184   :  { %v880_v46 = vmul.f32 %v879_v17, %v1762_v34  ;;  %v883_v47 = vstv %s2226_s1  ;;  %s2256_s6 = sld [smem:[#allocation3 + $0xe4]]  ;;  %v868_v6 = vstv %s2207_s25  ;;  %s1006_s1 = sshll.u32 %s1324_s26, 4  ;;  %s1007_s1 = int_to_ptr.vmem [resolvable:$true] %s1006_s1 }
 0x185   :  { %v877_v49 = vadd.f32 %v876_v58, %v873_v39  ;;  %v884_v50 = vmul.f32 %v883_v47, %v1801_v4  ;;  %v887_v51 = vstv %s2231_s23  ;;  %s2261_s4 = sld [smem:[#allocation3 + $0xee]]  ;;  %v858_v41 = vadd.f32 %v857_v45, %v854_v23  ;;  %s1296_s23 = scalar_lea.vmem %s1007_s1, 128 }
 0x186   :  { %v891_v56 = vstv %s2235_s16  ;;  %s2266_s24 = sld [smem:[#allocation3 + $0x8b]]  ;;  %v888_v62 = vmul.f32 %v887_v51, %v1932_v5  ;;  %p1297_p5 = scmp.ne.s32.totalorder %s1007_s1, %s1296_s23 }
 0x187   :  { %v881_v61 = vadd.f32 %v880_v46, %v877_v49  ;;  %s2270_s8 = sld [smem:[#allocation3 + $0x95]]  ;;  %v895_v2 = vstv %s2241_s3  ;;  %v892_v14 = vmul.f32 %v891_v56, %v1956_v44  ;;  %v862_v52 = vadd.f32 %v861_v53, %v858_v41  ;;  %p1301_p6 = scmp.lt.s32.totalorder %s1007_s1, %s1007_s1 }
 0x188   :  { %s2274_s20 = sld [smem:[#allocation3 + $0x9f]]  ;;  %v899_v21 = vstv %s2246_s18  ;;  %v896_v24 = vmul.f32 %v895_v2, %v1982_v0  ;;  %p1302_p7 = scmp.lt.s32.totalorder %s1296_s23, %s1296_s23 }
 0x189   :  { %v885_v12 = vadd.f32 %v884_v50, %v881_v61  ;;  %s2280_s28 = sld [smem:[#allocation3 + $0xa9]]  ;;  %v900_v32 = vmul.f32 %v899_v21, %v2007_v7  ;;  %v903_v38 = vstv %s2251_s9 }
 0x18a   :  { %s2287_s15 = sld [smem:[#allocation3 + $0xb3]]  ;;  %v904_v48 = vmul.f32 %v903_v38, %v2020_v16  ;;  %v907_v50 = vstv %s2256_s6  ;;  %p1303_p8 = por %p1302_p7, %p1301_p6 }
 0x18b   :  { %v889_v13 = vadd.f32 %v888_v62, %v885_v12  ;;  %s2291_s17 = sld [smem:[#allocation3 + $0xbd]]  ;;  %v908_v20 = vmul.f32 %v907_v50, %v2035_v30 }
 0x18c   :  { %v915_v29 = vstv %s2266_s24  ;;  %s2295_s5 = sld [smem:[#allocation3 + $0xc7]]  ;;  %p1304_p9 = pnand %p1303_p8, %p1297_p5 }
 0x18d   :  { %v893_v31 = vadd.f32 %v892_v14, %v889_v13  ;;  %v916_v33 = vmul.f32 %v915_v29, %v1745_v22  ;;  %v918_v36 = vstv %s2270_s8  ;;  %s2300_s29 = sld [smem:[#allocation3 + $0xd1]]  ;;  %v864_v22 = vstv %s2203_s27 }
 0x18e   :  { %v919_v39 = vmul.f32 %v918_v36, %v1751_v26  ;;  %v922_v40 = vstv %s2274_s20  ;;  %s2306_s30 = sld [smem:[#allocation3 + $0xdb]]  ;;  %v2317_v26 = vadd.f32 %v782_v19, %v780_v59  ;;  %v865_v55 = vmul.f32 %v864_v22, %v2035_v30 }
 0x18f   :  { %v897_v42 = vadd.f32 %v896_v24, %v893_v31  ;;  %v923_v58 = vmul.f32 %v922_v40, %v1762_v34  ;;  %v926_v17 = vstv %s2280_s28  ;;  %s2310_s0 = sld [smem:[#allocation3 + $0xe5]]  ;;  %v823_v34 = vadd.f32 %v822_v27, %v819_v28 }
 0x190   :  { %v920_v18 = vadd.f32 %v919_v39, %v916_v33  ;;  %v927_v43 = vmul.f32 %v926_v17, %v1801_v4  ;;  %v930_v46 = vstv %s2287_s15  ;;  %s2315_s2 = sld [smem:[#allocation3 + $0xef]]  ;;  %v825_v4 = vstv %s2152_s7 }
 0x191   :  { %v901_v47 = vadd.f32 %v900_v32, %v897_v42  ;;  %v934_v49 = vstv %s2291_s17  ;;  %s2321_s10 = sld [smem:[#allocation3 + $0xf0]]  ;;  %v931_v54 = vmul.f32 %v930_v46, %v1932_v5  ;;  %v784_v62 = vmax.f32 %v2317_v26, 0.0 }
 0x192   :  { %v924_v51 = vadd.f32 %v923_v58, %v920_v18  ;;  %s2325_s14 = sld [smem:[#allocation3 + $0xf1]]  ;;  %v938_v56 = vstv %s2295_s5  ;;  %v935_v5 = vmul.f32 %v934_v49, %v1956_v44  ;;  %v826_v2 = vadd.f32 %v825_v4, %v823_v34 }
 0x193   :  { %s2330_s19 = sld [smem:[#allocation3 + $0xf2]]  ;;  %v905_v63 = vadd.f32 %v904_v48, %v901_v47  ;;  %v942_v1 = vstv %s2300_s29  ;;  %v939_v12 = vmul.f32 %v938_v56, %v1982_v0  ;;  %v866_v44 = vadd.f32 %v865_v55, %v862_v52 }
 0x194   :  { %v928_v61 = vadd.f32 %v927_v43, %v924_v51  ;;  %s2335_s21 = sld [smem:[#allocation3 + $0xf3]]  ;;  %v911_v14 = vstv %s2261_s4  ;;  %v946_v15 = vstv %s2306_s30  ;;  %v943_v21 = vmul.f32 %v942_v1, %v2007_v7 }
 0x195   :  { %s2340_s7 = sld [smem:[#allocation3 + $0xf4]]  ;;  %v909_v0 = vadd.f32 %v908_v20, %v905_v63  ;;  %v950_v13 = vstv %s2310_s0  ;;  %v947_v27 = vmul.f32 %v946_v15, %v2020_v16  ;;  %v827_v36 = vmax.f32 %v826_v2, 0.0 }
 0x196   :  { %v932_v8 = vadd.f32 %v931_v54, %v928_v61  ;;  %s2344_s13 = sld [smem:[#allocation3 + $0xf5]]  ;;  %v951_v25 = vmul.f32 %v950_v13, %v2035_v30  ;;  %v954_v40 = vstv %s2315_s2 }
 0x197   :  { %v958_v19 = vstv %s2321_s10  ;;  %s2349_s27 = sld [smem:[#allocation3 + $0xf6]]  ;;  %v912_v16 = vadd.f32 %v911_v14, %v909_v0 }
 0x198   :  { %v936_v45 = vadd.f32 %v935_v5, %v932_v8  ;;  %v959_v23 = vmul.f32 %v958_v19, %v569_v60  ;;  %v961_v11 = vstv %s2325_s14  ;;  %s2355_s12 = sld [smem:[#allocation3 + $0xf7]]  ;;  %v869_v60 = vadd.f32 %v868_v6, %v866_v44 }
 0x199   :  { %v962_v24 = vmul.f32 %v961_v11, %v612_v10  ;;  %v965_v59 = vstv %s2330_s19  ;;  %s2365_s25 = sld [smem:[#allocation3 + $0xf8]]  ;;  %v913_v22 = vmax.f32 %v912_v16, 0.0 }
 0x19a   :  { %v940_v28 = vadd.f32 %v939_v12, %v936_v45  ;;  %v966_v7 = vmul.f32 %v965_v59, %v655_v9  ;;  %v969_v37 = vstv %s2335_s21  ;;  %s1263_s22 = sld [smem:[#allocation3 + $0xf9]]  ;;  %v870_v39 = vmax.f32 %v869_v60, 0.0 }
 0x19b   :  { %v963_v29 = vadd.f32 %v962_v24, %v959_v23  ;;  %v970_v31 = vmul.f32 %v969_v37, %v698_v57  ;;  %v973_v32 = vstv %s2340_s7  ;;  %s1264_s11 = sld [smem:[#allocation3 + $0xfa]] }
 0x19c   :  { %v944_v33 = vadd.f32 %v943_v21, %v940_v28  ;;  %v977_v10 = vstv %s2344_s13  ;;  %v974_v9 = vmul.f32 %v973_v32, %v741_v3 }
 0x19d   :  { %v967_v35 = vadd.f32 %v966_v7, %v963_v29  ;;  %v981_v38 = vstv %s2349_s27  ;;  %v978_v42 = vmul.f32 %v977_v10, %v784_v62 }
 0x19e   :  { %v948_v53 = vadd.f32 %v947_v27, %v944_v33  ;;  %v985_v17 = vstv %s2355_s12  ;;  %v982_v43 = vmul.f32 %v981_v38, %v827_v36 }
 0x19f   :  { %v971_v41 = vadd.f32 %v970_v31, %v967_v35  ;;  %v989_v30 = vstv %s2365_s25  ;;  %v986_v47 = vmul.f32 %v985_v17, %v870_v39 }
 0x1a0   :  { %v952_v58 = vadd.f32 %v951_v25, %v948_v53  ;;  %v993_v49 = vstv %s1263_s22  ;;  %v990_v50 = vmul.f32 %v989_v30, %v913_v22 }
 0x1a1   :  { %v975_v18 = vadd.f32 %v974_v9, %v971_v41  ;;  %v997_v52 = vstv %s1264_s11 }
 0x1a2   :  { %v955_v46 = vadd.f32 %v954_v40, %v952_v58 }
 0x1a3   :  { %v979_v26 = vadd.f32 %v978_v42, %v975_v18 }
 0x1a4   :  { %v956_v48 = vmax.f32 %v955_v46, 0.0 }
 0x1a5   :  { %v983_v34 = vadd.f32 %v982_v43, %v979_v26 }
 0x1a6   :  { %v994_v54 = vmul.f32 %v993_v49, %v956_v48 }
 0x1a7   :  { %v987_v51 = vadd.f32 %v986_v47, %v983_v34 }
 0x1a9   :  { %v991_v4 = vadd.f32 %v990_v50, %v987_v51 }
 0x1ab   :  { %v995_v55 = vadd.f32 %v994_v54, %v991_v4 }
 0x1ad   :  { %v998_v56 = vadd.f32 %v997_v52, %v995_v55 }
 0x1af   :  { %999 = vst [vmem:[#allocation7] sm:$0xff] %v998_v56 }
 0x1b0   :  { %1307 = shalt.err (!%p1304_p9)
}
 0x1b1   :  { %s2524_s18 = sld [smem:[#allocation50_spill]] }
 0x1b7   :  { %1009 = dma.vmem_to_hbm [thread:$0]  %s1007_s1, 128, %s2524_s18, [#allocation6]  }
 0x1b8   :  { %1320 = dma.done.wait [#allocation6], 128  }
 0x1b9   :  { %1321 = vsyncadd [#allocation6], 4294967168 }
 0x1ba   :  { %1013 = vsyncpa [#allocation5], 1 }
 0x1bb   :  { %1014 = vsyncpa [#allocation6], 1 }

</bundles_post_ra>
